<compile_context>
chip_gen: v7x
topology: tpu7x:2x2x1
jax: 0.10.0
libtpu: 0.0.40
codegen_flags: <defaults>
</compile_context>

<pallas_src>
import jax
import jax.numpy as jnp
from jax.experimental import pallas as pl
from jax.experimental.pallas import tpu as pltpu

IN_SIZE = 64      # latent length
HID = 1024        # hidden width of the Linear stack
H = 128           # self.H = 128 / scale
W = 1024          # self.W = 1024 / scale
TW = 256          # W-tile streamed per grid step (ww DMA overlaps tanh compute)


def wout_tanh_kernel(h3_ref, hout_ref, ww_ref, bw_ref, o_ref):
    # w_out_layer tile: (B, TW) = (B, HID) @ (HID, TW) + bias, f32 accumulate.
    w_tile = (jnp.dot(h3_ref[...], ww_ref[...],
                      preferred_element_type=jnp.float32) + bw_ref[...])
    # pattern tile: tanh(h[:, :, None] + w[:, None, :]) * 2 - 1
    # hout_ref is already (B, H, 1), so no per-step lane->sublane relayout.
    pat = jnp.tanh(hout_ref[...] + w_tile[:, None, :])       # (B, H, TW) f32
    o_ref[...] = pat * 2.0 - 1.0


def generator_net(x, params):
    """x: (N, C=1, 64) float32 -> (N, C=1, H, W) float32 in [-3, 1]."""
    N, C, L = x.shape
    assert L == IN_SIZE
    B = N * C
    w1, b1, w2, b2, w3, b3, wh, bh, ww, bw = params

    # ---- MLP trunk + h_out head in plain XLA (tiny, B=2, weight-DMA bound;
    #      XLA can overlap these loads with whatever precedes the call) ------
    xb = x.reshape(B, L).astype(jnp.bfloat16)
    h1 = (jnp.dot(xb, w1, preferred_element_type=jnp.float32)
          + b1).astype(jnp.bfloat16)                                  # in_layer
    h2 = jnp.maximum(
        jnp.dot(h1, w2, preferred_element_type=jnp.float32) + b2,
        0.0).astype(jnp.bfloat16)                                     # non_linears[0]
    h3 = jnp.maximum(
        jnp.dot(h2, w3, preferred_element_type=jnp.float32) + b3,
        0.0).astype(jnp.bfloat16)                                     # non_linears[1]
    hout = jnp.dot(h3, wh, preferred_element_type=jnp.float32) + bh   # h_out_layer
    hout3d = hout[:, :, None]                                         # (B, H, 1) f32

    # ---- Pallas: stream w_out weight, fuse w_out matmul + tanh epilogue ----
    n_w_tiles = W // TW
    cost = pl.CostEstimate(
        flops=2 * B * HID * W + 3 * B * H * W,
        transcendentals=B * H * W,
        bytes_accessed=(B * HID * 2          # h3 (bf16)
                        + B * H * 4          # h_out (f32)
                        + HID * W * 2        # ww (bf16, streamed)
                        + W * 4              # bw (f32)
                        + B * H * W * 4))    # output (f32)

    out = pl.pallas_call(
        wout_tanh_kernel,
        out_shape=jax.ShapeDtypeStruct((B, H, W), jnp.float32),
        grid_spec=pltpu.PrefetchScalarGridSpec(
            num_scalar_prefetch=0,
            grid=(n_w_tiles,),
            in_specs=[
                pl.BlockSpec((B, HID), lambda j: (0, 0)),       # h3     (resident, 4 KiB)
                pl.BlockSpec((B, H, 1), lambda j: (0, 0, 0)),   # h_out  (resident, 1 KiB)
                pl.BlockSpec((HID, TW), lambda j: (0, j)),      # ww     (streamed, 512 KiB)
                pl.BlockSpec((1, TW), lambda j: (0, j)),        # bw     (streamed)
            ],
            out_specs=pl.BlockSpec((B, H, TW), lambda j: (0, 0, j)),
        ),
        compiler_params=pltpu.CompilerParams(
            # No scratch carry across the W axis anymore -> parallel, so v7x's
            # two TensorCores each take half of the W tiles.
            dimension_semantics=("parallel",),
            # Actual residency is ~2 MiB; well under v7x's 64 MiB physical VMEM.
            vmem_limit_bytes=48 * 1024 * 1024),
        cost_estimate=cost,
    )(h3, hout3d, ww, bw)

    return out.reshape(N, C, H, W)


if __name__ == "__main__":
    key = jax.random.PRNGKey(0)
    ks = jax.random.split(key, 11)

    N, C = 2, 1
    x = jax.random.normal(ks[0], (N, C, IN_SIZE), jnp.float32)

    def init(k, shape, scale=0.02):
        return scale * jax.random.normal(k, shape, jnp.float32)

    # Synthetic deterministic parameters.  Weights are stored (in, out) so the
    # forward computes y = x @ W + b; real nn.Linear checkpoints are (out, in)
    # and MUST be transposed by the loader.  Large weights are bf16, biases f32.
    w1f = init(ks[1], (IN_SIZE, HID)); b1 = init(ks[2], (1, HID))
    w2f = init(ks[3], (HID, HID));     b2 = init(ks[4], (1, HID))
    w3f = init(ks[5], (HID, HID));     b3 = init(ks[6], (1, HID))
    whf = init(ks[7], (HID, H));       bh = init(ks[8], (1, H))
    wwf = init(ks[9], (HID, W));       bw = init(ks[10], (1, W))
    w1, w2, w3, wh, ww = (a.astype(jnp.bfloat16) for a in (w1f, w2f, w3f, whf, wwf))
    params = (w1, b1, w2, b2, w3, b3, wh, bh, ww, bw)

    out = jax.jit(generator_net)(x, params)
    out = jax.block_until_ready(out)
    assert out.shape == (N, C, H, W), out.shape

    # ---- Pure-JAX reference with the same mixed precision as the pipeline ----
    xb = x.reshape(N * C, IN_SIZE).astype(jnp.bfloat16)
    h1 = (jnp.dot(xb, w1, preferred_element_type=jnp.float32) + b1).astype(jnp.bfloat16)
    h2 = jnp.maximum(jnp.dot(h1, w2, preferred_element_type=jnp.float32) + b2,
                     0.0).astype(jnp.bfloat16)
    h3 = jnp.maximum(jnp.dot(h2, w3, preferred_element_type=jnp.float32) + b3,
                     0.0).astype(jnp.bfloat16)
    ho = jnp.dot(h3, wh, preferred_element_type=jnp.float32) + bh
    wo = jnp.dot(h3, ww, preferred_element_type=jnp.float32) + bw
    ref = (jnp.tanh(ho[:, :, None] + wo[:, None, :]) * 2.0 - 1.0).reshape(N, C, H, W)
    max_err = float(jnp.max(jnp.abs(out - ref)))
    assert max_err < 5e-3, max_err

    # ---- Secondary check vs a full-f32 reference (bounds the bf16-weight
    #      precision policy itself, per review; loose tolerance) -------------
    xf = x.reshape(N * C, IN_SIZE)
    f1 = jnp.dot(xf, w1f) + b1
    f2 = jnp.maximum(jnp.dot(f1, w2f) + b2, 0.0)
    f3 = jnp.maximum(jnp.dot(f2, w3f) + b3, 0.0)
    hof = jnp.dot(f3, whf) + bh
    wof = jnp.dot(f3, wwf) + bw
    ref32 = (jnp.tanh(hof[:, :, None] + wof[:, None, :]) * 2.0 - 1.0).reshape(N, C, H, W)
    max_err32 = float(jnp.max(jnp.abs(out - ref32)))
    assert max_err32 < 5e-2, max_err32

    print("KERNEL_OK")
</pallas_src>

<mosaic_0001>
module attributes {stable_mosaic.version = 11 : i64} {
  func.func @wout_tanh_kernel(%arg0: i32, %arg1: memref<2x1024xbf16, #tpu.memory_space<vmem>>, %arg2: memref<2x128x1xf32, #tpu.memory_space<vmem>>, %arg3: memref<1024x256xbf16, #tpu.memory_space<vmem>>, %arg4: memref<1x256xf32, #tpu.memory_space<vmem>>, %arg5: memref<2x128x256xf32, #tpu.memory_space<vmem>>) attributes {dimension_semantics = [#tpu.dimension_semantics<parallel>], iteration_bounds = array<i64: 4>, scalar_prefetch = 0 : i64, scratch_operands = 0 : i64, tpu.core_type = #tpu.core_type<tc>, window_params = [{pipeline_mode = #tpu.pipeline_mode<synchronous>, transform_indices = @transform_0, window_bounds = array<i64: 2, 1024>}, {pipeline_mode = #tpu.pipeline_mode<synchronous>, transform_indices = @transform_1, window_bounds = array<i64: 2, 128, 1>}, {transform_indices = @transform_2, window_bounds = array<i64: 1024, 256>}, {transform_indices = @transform_3, window_bounds = array<i64: 1, 256>}, {transform_indices = @transform_4, window_bounds = array<i64: 2, 128, 256>}]} {
    %c0 = arith.constant 0 : index
    %c0_0 = arith.constant 0 : index
    %0 = vector.load %arg1[%c0, %c0_0] : memref<2x1024xbf16, #tpu.memory_space<vmem>>, vector<2x1024xbf16>
    %c0_1 = arith.constant 0 : index
    %c0_2 = arith.constant 0 : index
    %1 = vector.load %arg3[%c0_1, %c0_2] : memref<1024x256xbf16, #tpu.memory_space<vmem>>, vector<1024x256xbf16>
    %cst = arith.constant dense<0.000000e+00> : vector<2x256xf32>
    %2 = tpu.matmul %0, %1, %cst {dimension_numbers = #tpu.dot_dimension_numbers<[1], [0], [0], [1], [0, 0, 1, 1], [], []>} : vector<2x1024xbf16>, vector<1024x256xbf16>, vector<2x256xf32> -> vector<2x256xf32>
    %c0_3 = arith.constant 0 : index
    %c0_4 = arith.constant 0 : index
    %3 = vector.load %arg4[%c0_3, %c0_4] : memref<1x256xf32, #tpu.memory_space<vmem>>, vector<1x256xf32>
    %4 = vector.broadcast %3 : vector<1x256xf32> to vector<2x256xf32>
    %5 = arith.addf %2, %4 : vector<2x256xf32>
    %c0_5 = arith.constant 0 : index
    %c0_6 = arith.constant 0 : index
    %c0_7 = arith.constant 0 : index
    %6 = vector.load %arg2[%c0_5, %c0_6, %c0_7] : memref<2x128x1xf32, #tpu.memory_space<vmem>>, vector<2x128x1xf32>
    %7 = vector.shape_cast %5 : vector<2x256xf32> to vector<2x1x256xf32>
    %8 = vector.broadcast %6 : vector<2x128x1xf32> to vector<2x128x256xf32>
    %9 = vector.broadcast %7 : vector<2x1x256xf32> to vector<2x128x256xf32>
    %10 = arith.addf %8, %9 : vector<2x128x256xf32>
    %11 = math.tanh %10 : vector<2x128x256xf32>
    %cst_8 = arith.constant 2.000000e+00 : f32
    %12 = vector.broadcast %cst_8 : f32 to vector<2x128x256xf32>
    %13 = arith.mulf %11, %12 : vector<2x128x256xf32>
    %cst_9 = arith.constant 1.000000e+00 : f32
    %14 = vector.broadcast %cst_9 : f32 to vector<2x128x256xf32>
    %15 = arith.subf %13, %14 : vector<2x128x256xf32>
    %c0_10 = arith.constant 0 : index
    %c0_11 = arith.constant 0 : index
    %c0_12 = arith.constant 0 : index
    %16 = vector.load %arg5[%c0_10, %c0_11, %c0_12] : memref<2x128x256xf32, #tpu.memory_space<vmem>>, vector<2x128x256xf32>
    tpu.vector_store %arg5[%c0_10, %c0_11, %c0_12], %15 {strides = array<i32>} : memref<2x128x256xf32, #tpu.memory_space<vmem>>, vector<2x128x256xf32>,
    return
  }
  func.func @transform_0(%arg0: i32) -> (i32, i32) {
    %c0_i32 = arith.constant 0 : i32
    %c0_i32_0 = arith.constant 0 : i32
    %c0_i32_1 = arith.constant 0 : i32
    return %c0_i32, %c0_i32_0 : i32, i32
  }
  func.func @transform_1(%arg0: i32) -> (i32, i32, i32) {
    %c0_i32 = arith.constant 0 : i32
    %c0_i32_0 = arith.constant 0 : i32
    %c0_i32_1 = arith.constant 0 : i32
    %c0_i32_2 = arith.constant 0 : i32
    return %c0_i32, %c0_i32_0, %c0_i32_1 : i32, i32, i32
  }
  func.func @transform_2(%arg0: i32) -> (i32, i32) {
    %c0_i32 = arith.constant 0 : i32
    %c0_i32_0 = arith.constant 0 : i32
    return %c0_i32, %arg0 : i32, i32
  }
  func.func @transform_3(%arg0: i32) -> (i32, i32) {
    %c0_i32 = arith.constant 0 : i32
    %c0_i32_0 = arith.constant 0 : i32
    return %c0_i32, %arg0 : i32, i32
  }
  func.func @transform_4(%arg0: i32) -> (i32, i32, i32) {
    %c0_i32 = arith.constant 0 : i32
    %c0_i32_0 = arith.constant 0 : i32
    %c0_i32_1 = arith.constant 0 : i32
    return %c0_i32, %c0_i32_0, %arg0 : i32, i32, i32
  }
}

</mosaic_0001>

<bundles_post_ra>
// kernel: generator_net.1
= control target key start
LH: loop header
LB: loop body
LE: loop exit
PB: predicated region body
PF: predicated region fallthrough
CT: control target
= control target key end

     0   :  { %9 = vsyncpa [#allocation4], 0  ;;  %s3949_s0 = inlined_call_operand.vmem [shape: bf16[2,1024], index: 0, kind: input, shape index: {}]   ;;  %s3950_s1 = inlined_call_operand.vmem [shape: f32[2,128,1], index: 1, kind: input, shape index: {}]   ;;  %s3951_s2 = inlined_call_operand.vmem [shape: bf16[1024,1024], index: 2, kind: input, shape index: {}]   ;;  %s3952_s3 = inlined_call_operand.vmem [shape: f32[1,1024], index: 3, kind: input, shape index: {}]   ;;  %s3953_s4 = inlined_call_operand.hbm [shape: f32[2,128,1024], index: 4, kind: output, shape index: {}]  }
   0x1   :  { %11 = vsyncpa [#allocation4 + $0x1], 0  ;;  %s3094_s15 = smov 0   ;;  %s3096_s16 = smov 0  }
   0x2   :  { %s3098_s17 = smov 0   ;;  %s3100_s18 = smov 0  }
   0x3 LB: > { %s3115_s19 = sadd.s32 4294967295, %s3061_s18   ;;  %s2411_s20 = sadd.s32 4294967294, %s3061_s18   ;;  %s3061_s18 = sphi %s3100_s18, %s3959_s18   ;;  %s3057_s17 = sphi %s3098_s17, %s3958_s17   ;;  %s3053_s16 = sphi %s3096_s16, %s3957_s16   ;;  %s3049_s15 = sphi %s3094_s15, %s3956_s15  }
   0x4   : > { %s3119_s21 = sadd.s32 1, %s3061_s18   ;;  %s66_s22 = sadd.s32 1, %s3057_s17 }
   0x5   : > { %s63_s23 = ssub.s32 %s3061_s18, %s3119_s21  ;;  %p73_p0 = scmp.ne.s32.totalorder %s3057_s17, %s3053_s16 }
   0x6   : > { %p64_p1 = scmp.eq.s32.totalorder %s63_s23, 0  ;;  %p74_p2 = scmp.eq.s32.totalorder %s3061_s18, 0 }
   0x7   : > { %p129_p3 = scmp.eq.s32.totalorder %s3115_s19, 3  ;;  %p134_p4 = scmp.ne.s32.totalorder %s3053_s16, %s3049_s15 }
   0x8   : > { %s3131_s24 = scalar_select %p64_p1, %s3057_s17, %s66_s22  }
   0x9   : > { %p75_p5 = por %p74_p2, %p73_p0  ;;  %p3133_p6 = por %p129_p3, %p73_p0 }
   0xa   : > { %p135_p7 = scmp.eq.s32.totalorder %s2411_s20, 3  ;;  %p2413_p9 = scmp.ge.s32.totalorder %s3061_s18, 4 }
   0xc   : > { %p3137_p8 = por %p135_p7, %p134_p4  ;;  %157 = sbr.rel (%p2413_p9) target bundleno = 151 (0x97), region = 24 }
  0x13   : > { %160 = sbr.rel (!%p75_p5) target bundleno = 151 (0x97), region = 28  ;;  %s162_s27 = sand.u32 (%p75_p5), 1, %s3057_s17  }
  0x14   : > { %s2618_s28 = sshll.u32 (%p75_p5), %s3061_s18, 3  ;;  %s2414_s29 = sshll.u32 (%p75_p5), %s162_s27, 10 }
  0x15   : > { %s3147_s6 = scalar_lea.vmem (%p75_p5), %s3951_s2, %s2618_s28  ;;  %s3152_s7 = scalar_lea.vmem (%p75_p5), [#allocation2], %s2414_s29 }
  0x16   : > { %v449_v0 = vld [vmem:[%s3147_s6] sm:$0xff] (%p75_p5) }
  0x17   : > { %v451_v1 = vld [vmem:[%s3147_s6 + $0x20] sm:$0xff] (%p75_p5)  ;;  %450 = vst [vmem:[%s3152_s7] sm:$0xff] (%p75_p5), %v449_v0 }
  0x18   : > { %v453_v2 = vld [vmem:[%s3147_s6 + $0x40] sm:$0xff] (%p75_p5)  ;;  %452 = vst [vmem:[%s3152_s7 + $0x8] sm:$0xff] (%p75_p5), %v451_v1 }
  0x19   : > { %454 = vst [vmem:[%s3152_s7 + $0x10] sm:$0xff] (%p75_p5), %v453_v2  ;;  %v455_v3 = vld [vmem:[%s3147_s6 + $0x60] sm:$0xff] (%p75_p5) }
  0x1a   : > { %v457_v4 = vld [vmem:[%s3147_s6 + $0x80] sm:$0xff]  ;;  %456 = vst [vmem:[%s3152_s7 + $0x18] sm:$0xff] %v455_v3 }
  0x1b   : > { %v459_v5 = vld [vmem:[%s3147_s6 + $0xa0] sm:$0xff]  ;;  %458 = vst [vmem:[%s3152_s7 + $0x20] sm:$0xff] %v457_v4 }
  0x1c   : > { %460 = vst [vmem:[%s3152_s7 + $0x28] sm:$0xff] %v459_v5  ;;  %v461_v6 = vld [vmem:[%s3147_s6 + $0xc0] sm:$0xff] }
  0x1d   : > { %v463_v7 = vld [vmem:[%s3147_s6 + $0xe0] sm:$0xff]  ;;  %462 = vst [vmem:[%s3152_s7 + $0x30] sm:$0xff] %v461_v6 }
  0x1e   : > { %v465_v8 = vld [vmem:[%s3147_s6 + $0x100] sm:$0xff]  ;;  %464 = vst [vmem:[%s3152_s7 + $0x38] sm:$0xff] %v463_v7 }
  0x1f   : > { %466 = vst [vmem:[%s3152_s7 + $0x40] sm:$0xff] %v465_v8  ;;  %v467_v9 = vld [vmem:[%s3147_s6 + $0x120] sm:$0xff] }
  0x20   : > { %v469_v10 = vld [vmem:[%s3147_s6 + $0x140] sm:$0xff]  ;;  %468 = vst [vmem:[%s3152_s7 + $0x48] sm:$0xff] %v467_v9 }
  0x21   : > { %v471_v11 = vld [vmem:[%s3147_s6 + $0x160] sm:$0xff]  ;;  %470 = vst [vmem:[%s3152_s7 + $0x50] sm:$0xff] %v469_v10 }
  0x22   : > { %472 = vst [vmem:[%s3152_s7 + $0x58] sm:$0xff] %v471_v11  ;;  %v473_v12 = vld [vmem:[%s3147_s6 + $0x180] sm:$0xff] }
  0x23   : > { %v475_v13 = vld [vmem:[%s3147_s6 + $0x1a0] sm:$0xff]  ;;  %474 = vst [vmem:[%s3152_s7 + $0x60] sm:$0xff] %v473_v12 }
  0x24   : > { %v477_v14 = vld [vmem:[%s3147_s6 + $0x1c0] sm:$0xff]  ;;  %476 = vst [vmem:[%s3152_s7 + $0x68] sm:$0xff] %v475_v13 }
  0x25   : > { %478 = vst [vmem:[%s3152_s7 + $0x70] sm:$0xff] %v477_v14  ;;  %v479_v15 = vld [vmem:[%s3147_s6 + $0x1e0] sm:$0xff] }
  0x26   : > { %v481_v16 = vld [vmem:[%s3147_s6 + $0x200] sm:$0xff]  ;;  %480 = vst [vmem:[%s3152_s7 + $0x78] sm:$0xff] %v479_v15 }
  0x27   : > { %v483_v17 = vld [vmem:[%s3147_s6 + $0x220] sm:$0xff]  ;;  %482 = vst [vmem:[%s3152_s7 + $0x80] sm:$0xff] %v481_v16 }
  0x28   : > { %484 = vst [vmem:[%s3152_s7 + $0x88] sm:$0xff] %v483_v17  ;;  %v485_v18 = vld [vmem:[%s3147_s6 + $0x240] sm:$0xff] }
  0x29   : > { %v487_v19 = vld [vmem:[%s3147_s6 + $0x260] sm:$0xff]  ;;  %486 = vst [vmem:[%s3152_s7 + $0x90] sm:$0xff] %v485_v18 }
  0x2a   : > { %v489_v20 = vld [vmem:[%s3147_s6 + $0x280] sm:$0xff]  ;;  %488 = vst [vmem:[%s3152_s7 + $0x98] sm:$0xff] %v487_v19 }
  0x2b   : > { %490 = vst [vmem:[%s3152_s7 + $0xa0] sm:$0xff] %v489_v20  ;;  %v491_v21 = vld [vmem:[%s3147_s6 + $0x2a0] sm:$0xff] }
  0x2c   : > { %v493_v22 = vld [vmem:[%s3147_s6 + $0x2c0] sm:$0xff]  ;;  %492 = vst [vmem:[%s3152_s7 + $0xa8] sm:$0xff] %v491_v21 }
  0x2d   : > { %v495_v23 = vld [vmem:[%s3147_s6 + $0x2e0] sm:$0xff]  ;;  %494 = vst [vmem:[%s3152_s7 + $0xb0] sm:$0xff] %v493_v22 }
  0x2e   : > { %496 = vst [vmem:[%s3152_s7 + $0xb8] sm:$0xff] %v495_v23  ;;  %v497_v24 = vld [vmem:[%s3147_s6 + $0x300] sm:$0xff] }
  0x2f   : > { %v499_v25 = vld [vmem:[%s3147_s6 + $0x320] sm:$0xff]  ;;  %498 = vst [vmem:[%s3152_s7 + $0xc0] sm:$0xff] %v497_v24 }
  0x30   : > { %v501_v26 = vld [vmem:[%s3147_s6 + $0x340] sm:$0xff]  ;;  %500 = vst [vmem:[%s3152_s7 + $0xc8] sm:$0xff] %v499_v25 }
  0x31   : > { %502 = vst [vmem:[%s3152_s7 + $0xd0] sm:$0xff] %v501_v26  ;;  %v503_v27 = vld [vmem:[%s3147_s6 + $0x360] sm:$0xff] }
  0x32   : > { %v505_v28 = vld [vmem:[%s3147_s6 + $0x380] sm:$0xff]  ;;  %504 = vst [vmem:[%s3152_s7 + $0xd8] sm:$0xff] %v503_v27 }
  0x33   : > { %v507_v29 = vld [vmem:[%s3147_s6 + $0x3a0] sm:$0xff]  ;;  %506 = vst [vmem:[%s3152_s7 + $0xe0] sm:$0xff] %v505_v28 }
  0x34   : > { %508 = vst [vmem:[%s3152_s7 + $0xe8] sm:$0xff] %v507_v29  ;;  %v509_v30 = vld [vmem:[%s3147_s6 + $0x3c0] sm:$0xff] }
  0x35   : > { %v511_v31 = vld [vmem:[%s3147_s6 + $0x3e0] sm:$0xff]  ;;  %510 = vst [vmem:[%s3152_s7 + $0xf0] sm:$0xff] %v509_v30 }
  0x36   : > { %v513_v32 = vld [vmem:[%s3147_s6 + $0x400] sm:$0xff]  ;;  %512 = vst [vmem:[%s3152_s7 + $0xf8] sm:$0xff] %v511_v31 }
  0x37   : > { %514 = vst [vmem:[%s3152_s7 + $0x100] sm:$0xff] %v513_v32  ;;  %v515_v33 = vld [vmem:[%s3147_s6 + $0x420] sm:$0xff] }
  0x38   : > { %v517_v34 = vld [vmem:[%s3147_s6 + $0x440] sm:$0xff]  ;;  %516 = vst [vmem:[%s3152_s7 + $0x108] sm:$0xff] %v515_v33 }
  0x39   : > { %v519_v35 = vld [vmem:[%s3147_s6 + $0x460] sm:$0xff]  ;;  %518 = vst [vmem:[%s3152_s7 + $0x110] sm:$0xff] %v517_v34 }
  0x3a   : > { %520 = vst [vmem:[%s3152_s7 + $0x118] sm:$0xff] %v519_v35  ;;  %v521_v36 = vld [vmem:[%s3147_s6 + $0x480] sm:$0xff] }
  0x3b   : > { %v523_v37 = vld [vmem:[%s3147_s6 + $0x4a0] sm:$0xff]  ;;  %522 = vst [vmem:[%s3152_s7 + $0x120] sm:$0xff] %v521_v36 }
  0x3c   : > { %v525_v38 = vld [vmem:[%s3147_s6 + $0x4c0] sm:$0xff]  ;;  %524 = vst [vmem:[%s3152_s7 + $0x128] sm:$0xff] %v523_v37 }
  0x3d   : > { %526 = vst [vmem:[%s3152_s7 + $0x130] sm:$0xff] %v525_v38  ;;  %v527_v39 = vld [vmem:[%s3147_s6 + $0x4e0] sm:$0xff] }
  0x3e   : > { %v529_v40 = vld [vmem:[%s3147_s6 + $0x500] sm:$0xff]  ;;  %528 = vst [vmem:[%s3152_s7 + $0x138] sm:$0xff] %v527_v39 }
  0x3f   : > { %v531_v41 = vld [vmem:[%s3147_s6 + $0x520] sm:$0xff]  ;;  %530 = vst [vmem:[%s3152_s7 + $0x140] sm:$0xff] %v529_v40 }
  0x40   : > { %532 = vst [vmem:[%s3152_s7 + $0x148] sm:$0xff] %v531_v41  ;;  %v533_v42 = vld [vmem:[%s3147_s6 + $0x540] sm:$0xff] }
  0x41   : > { %v535_v43 = vld [vmem:[%s3147_s6 + $0x560] sm:$0xff]  ;;  %534 = vst [vmem:[%s3152_s7 + $0x150] sm:$0xff] %v533_v42 }
  0x42   : > { %v537_v44 = vld [vmem:[%s3147_s6 + $0x580] sm:$0xff]  ;;  %536 = vst [vmem:[%s3152_s7 + $0x158] sm:$0xff] %v535_v43 }
  0x43   : > { %538 = vst [vmem:[%s3152_s7 + $0x160] sm:$0xff] %v537_v44  ;;  %v539_v45 = vld [vmem:[%s3147_s6 + $0x5a0] sm:$0xff] }
  0x44   : > { %v541_v46 = vld [vmem:[%s3147_s6 + $0x5c0] sm:$0xff]  ;;  %540 = vst [vmem:[%s3152_s7 + $0x168] sm:$0xff] %v539_v45 }
  0x45   : > { %v543_v47 = vld [vmem:[%s3147_s6 + $0x5e0] sm:$0xff]  ;;  %542 = vst [vmem:[%s3152_s7 + $0x170] sm:$0xff] %v541_v46 }
  0x46   : > { %544 = vst [vmem:[%s3152_s7 + $0x178] sm:$0xff] %v543_v47  ;;  %v545_v48 = vld [vmem:[%s3147_s6 + $0x600] sm:$0xff] }
  0x47   : > { %v547_v49 = vld [vmem:[%s3147_s6 + $0x620] sm:$0xff]  ;;  %546 = vst [vmem:[%s3152_s7 + $0x180] sm:$0xff] %v545_v48 }
  0x48   : > { %v549_v50 = vld [vmem:[%s3147_s6 + $0x640] sm:$0xff]  ;;  %548 = vst [vmem:[%s3152_s7 + $0x188] sm:$0xff] %v547_v49 }
  0x49   : > { %550 = vst [vmem:[%s3152_s7 + $0x190] sm:$0xff] %v549_v50  ;;  %v551_v51 = vld [vmem:[%s3147_s6 + $0x660] sm:$0xff] }
  0x4a   : > { %v553_v52 = vld [vmem:[%s3147_s6 + $0x680] sm:$0xff]  ;;  %552 = vst [vmem:[%s3152_s7 + $0x198] sm:$0xff] %v551_v51 }
  0x4b   : > { %v555_v53 = vld [vmem:[%s3147_s6 + $0x6a0] sm:$0xff]  ;;  %554 = vst [vmem:[%s3152_s7 + $0x1a0] sm:$0xff] %v553_v52 }
  0x4c   : > { %556 = vst [vmem:[%s3152_s7 + $0x1a8] sm:$0xff] %v555_v53  ;;  %v557_v54 = vld [vmem:[%s3147_s6 + $0x6c0] sm:$0xff] }
  0x4d   : > { %v559_v55 = vld [vmem:[%s3147_s6 + $0x6e0] sm:$0xff]  ;;  %558 = vst [vmem:[%s3152_s7 + $0x1b0] sm:$0xff] %v557_v54 }
  0x4e   : > { %v561_v56 = vld [vmem:[%s3147_s6 + $0x700] sm:$0xff]  ;;  %560 = vst [vmem:[%s3152_s7 + $0x1b8] sm:$0xff] %v559_v55 }
  0x4f   : > { %562 = vst [vmem:[%s3152_s7 + $0x1c0] sm:$0xff] %v561_v56  ;;  %v563_v57 = vld [vmem:[%s3147_s6 + $0x720] sm:$0xff] }
  0x50   : > { %v565_v58 = vld [vmem:[%s3147_s6 + $0x740] sm:$0xff]  ;;  %564 = vst [vmem:[%s3152_s7 + $0x1c8] sm:$0xff] %v563_v57 }
  0x51   : > { %v567_v59 = vld [vmem:[%s3147_s6 + $0x760] sm:$0xff]  ;;  %566 = vst [vmem:[%s3152_s7 + $0x1d0] sm:$0xff] %v565_v58 }
  0x52   : > { %568 = vst [vmem:[%s3152_s7 + $0x1d8] sm:$0xff] %v567_v59  ;;  %v569_v60 = vld [vmem:[%s3147_s6 + $0x780] sm:$0xff] }
  0x53   : > { %v571_v61 = vld [vmem:[%s3147_s6 + $0x7a0] sm:$0xff]  ;;  %570 = vst [vmem:[%s3152_s7 + $0x1e0] sm:$0xff] %v569_v60 }
  0x54   : > { %v573_v62 = vld [vmem:[%s3147_s6 + $0x7c0] sm:$0xff]  ;;  %572 = vst [vmem:[%s3152_s7 + $0x1e8] sm:$0xff] %v571_v61 }
  0x55   : > { %574 = vst [vmem:[%s3152_s7 + $0x1f0] sm:$0xff] %v573_v62  ;;  %v575_v63 = vld [vmem:[%s3147_s6 + $0x7e0] sm:$0xff] }
  0x56   : > { %v577_v0 = vld [vmem:[%s3147_s6 + $0x800] sm:$0xff]  ;;  %576 = vst [vmem:[%s3152_s7 + $0x1f8] sm:$0xff] %v575_v63 }
  0x57   : > { %v579_v1 = vld [vmem:[%s3147_s6 + $0x820] sm:$0xff]  ;;  %578 = vst [vmem:[%s3152_s7 + $0x200] sm:$0xff] %v577_v0 }
  0x58   : > { %580 = vst [vmem:[%s3152_s7 + $0x208] sm:$0xff] %v579_v1  ;;  %v581_v2 = vld [vmem:[%s3147_s6 + $0x840] sm:$0xff] }
  0x59   : > { %v583_v3 = vld [vmem:[%s3147_s6 + $0x860] sm:$0xff]  ;;  %582 = vst [vmem:[%s3152_s7 + $0x210] sm:$0xff] %v581_v2 }
  0x5a   : > { %v585_v4 = vld [vmem:[%s3147_s6 + $0x880] sm:$0xff]  ;;  %584 = vst [vmem:[%s3152_s7 + $0x218] sm:$0xff] %v583_v3 }
  0x5b   : > { %586 = vst [vmem:[%s3152_s7 + $0x220] sm:$0xff] %v585_v4  ;;  %v587_v5 = vld [vmem:[%s3147_s6 + $0x8a0] sm:$0xff] }
  0x5c   : > { %v589_v6 = vld [vmem:[%s3147_s6 + $0x8c0] sm:$0xff]  ;;  %588 = vst [vmem:[%s3152_s7 + $0x228] sm:$0xff] %v587_v5 }
  0x5d   : > { %v591_v7 = vld [vmem:[%s3147_s6 + $0x8e0] sm:$0xff]  ;;  %590 = vst [vmem:[%s3152_s7 + $0x230] sm:$0xff] %v589_v6 }
  0x5e   : > { %592 = vst [vmem:[%s3152_s7 + $0x238] sm:$0xff] %v591_v7  ;;  %v593_v8 = vld [vmem:[%s3147_s6 + $0x900] sm:$0xff] }
  0x5f   : > { %v595_v9 = vld [vmem:[%s3147_s6 + $0x920] sm:$0xff]  ;;  %594 = vst [vmem:[%s3152_s7 + $0x240] sm:$0xff] %v593_v8 }
  0x60   : > { %v597_v10 = vld [vmem:[%s3147_s6 + $0x940] sm:$0xff]  ;;  %596 = vst [vmem:[%s3152_s7 + $0x248] sm:$0xff] %v595_v9 }
  0x61   : > { %598 = vst [vmem:[%s3152_s7 + $0x250] sm:$0xff] %v597_v10  ;;  %v599_v11 = vld [vmem:[%s3147_s6 + $0x960] sm:$0xff] }
  0x62   : > { %v601_v12 = vld [vmem:[%s3147_s6 + $0x980] sm:$0xff]  ;;  %600 = vst [vmem:[%s3152_s7 + $0x258] sm:$0xff] %v599_v11 }
  0x63   : > { %v603_v13 = vld [vmem:[%s3147_s6 + $0x9a0] sm:$0xff]  ;;  %602 = vst [vmem:[%s3152_s7 + $0x260] sm:$0xff] %v601_v12 }
  0x64   : > { %604 = vst [vmem:[%s3152_s7 + $0x268] sm:$0xff] %v603_v13  ;;  %v605_v14 = vld [vmem:[%s3147_s6 + $0x9c0] sm:$0xff] }
  0x65   : > { %v607_v15 = vld [vmem:[%s3147_s6 + $0x9e0] sm:$0xff]  ;;  %606 = vst [vmem:[%s3152_s7 + $0x270] sm:$0xff] %v605_v14 }
  0x66   : > { %v609_v16 = vld [vmem:[%s3147_s6 + $0xa00] sm:$0xff]  ;;  %608 = vst [vmem:[%s3152_s7 + $0x278] sm:$0xff] %v607_v15 }
  0x67   : > { %610 = vst [vmem:[%s3152_s7 + $0x280] sm:$0xff] %v609_v16  ;;  %v611_v17 = vld [vmem:[%s3147_s6 + $0xa20] sm:$0xff] }
  0x68   : > { %v613_v18 = vld [vmem:[%s3147_s6 + $0xa40] sm:$0xff]  ;;  %612 = vst [vmem:[%s3152_s7 + $0x288] sm:$0xff] %v611_v17 }
  0x69   : > { %v615_v19 = vld [vmem:[%s3147_s6 + $0xa60] sm:$0xff]  ;;  %614 = vst [vmem:[%s3152_s7 + $0x290] sm:$0xff] %v613_v18 }
  0x6a   : > { %616 = vst [vmem:[%s3152_s7 + $0x298] sm:$0xff] %v615_v19  ;;  %v617_v20 = vld [vmem:[%s3147_s6 + $0xa80] sm:$0xff] }
  0x6b   : > { %v619_v21 = vld [vmem:[%s3147_s6 + $0xaa0] sm:$0xff]  ;;  %618 = vst [vmem:[%s3152_s7 + $0x2a0] sm:$0xff] %v617_v20 }
  0x6c   : > { %v621_v22 = vld [vmem:[%s3147_s6 + $0xac0] sm:$0xff]  ;;  %620 = vst [vmem:[%s3152_s7 + $0x2a8] sm:$0xff] %v619_v21 }
  0x6d   : > { %622 = vst [vmem:[%s3152_s7 + $0x2b0] sm:$0xff] %v621_v22  ;;  %v623_v23 = vld [vmem:[%s3147_s6 + $0xae0] sm:$0xff] }
  0x6e   : > { %v625_v24 = vld [vmem:[%s3147_s6 + $0xb00] sm:$0xff]  ;;  %624 = vst [vmem:[%s3152_s7 + $0x2b8] sm:$0xff] %v623_v23 }
  0x6f   : > { %v627_v25 = vld [vmem:[%s3147_s6 + $0xb20] sm:$0xff]  ;;  %626 = vst [vmem:[%s3152_s7 + $0x2c0] sm:$0xff] %v625_v24 }
  0x70   : > { %628 = vst [vmem:[%s3152_s7 + $0x2c8] sm:$0xff] %v627_v25  ;;  %v629_v26 = vld [vmem:[%s3147_s6 + $0xb40] sm:$0xff] }
  0x71   : > { %v631_v27 = vld [vmem:[%s3147_s6 + $0xb60] sm:$0xff]  ;;  %630 = vst [vmem:[%s3152_s7 + $0x2d0] sm:$0xff] %v629_v26 }
  0x72   : > { %v633_v28 = vld [vmem:[%s3147_s6 + $0xb80] sm:$0xff]  ;;  %632 = vst [vmem:[%s3152_s7 + $0x2d8] sm:$0xff] %v631_v27 }
  0x73   : > { %634 = vst [vmem:[%s3152_s7 + $0x2e0] sm:$0xff] %v633_v28  ;;  %v635_v29 = vld [vmem:[%s3147_s6 + $0xba0] sm:$0xff] }
  0x74   : > { %v637_v30 = vld [vmem:[%s3147_s6 + $0xbc0] sm:$0xff]  ;;  %636 = vst [vmem:[%s3152_s7 + $0x2e8] sm:$0xff] %v635_v29 }
  0x75   : > { %v639_v31 = vld [vmem:[%s3147_s6 + $0xbe0] sm:$0xff]  ;;  %638 = vst [vmem:[%s3152_s7 + $0x2f0] sm:$0xff] %v637_v30 }
  0x76   : > { %640 = vst [vmem:[%s3152_s7 + $0x2f8] sm:$0xff] %v639_v31  ;;  %v641_v32 = vld [vmem:[%s3147_s6 + $0xc00] sm:$0xff] }
  0x77   : > { %v643_v33 = vld [vmem:[%s3147_s6 + $0xc20] sm:$0xff]  ;;  %642 = vst [vmem:[%s3152_s7 + $0x300] sm:$0xff] %v641_v32 }
  0x78   : > { %v645_v34 = vld [vmem:[%s3147_s6 + $0xc40] sm:$0xff]  ;;  %644 = vst [vmem:[%s3152_s7 + $0x308] sm:$0xff] %v643_v33 }
  0x79   : > { %646 = vst [vmem:[%s3152_s7 + $0x310] sm:$0xff] %v645_v34  ;;  %v647_v35 = vld [vmem:[%s3147_s6 + $0xc60] sm:$0xff] }
  0x7a   : > { %v649_v36 = vld [vmem:[%s3147_s6 + $0xc80] sm:$0xff]  ;;  %648 = vst [vmem:[%s3152_s7 + $0x318] sm:$0xff] %v647_v35 }
  0x7b   : > { %v651_v37 = vld [vmem:[%s3147_s6 + $0xca0] sm:$0xff]  ;;  %650 = vst [vmem:[%s3152_s7 + $0x320] sm:$0xff] %v649_v36 }
  0x7c   : > { %652 = vst [vmem:[%s3152_s7 + $0x328] sm:$0xff] %v651_v37  ;;  %v653_v38 = vld [vmem:[%s3147_s6 + $0xcc0] sm:$0xff] }
  0x7d   : > { %v655_v39 = vld [vmem:[%s3147_s6 + $0xce0] sm:$0xff]  ;;  %654 = vst [vmem:[%s3152_s7 + $0x330] sm:$0xff] %v653_v38 }
  0x7e   : > { %v657_v40 = vld [vmem:[%s3147_s6 + $0xd00] sm:$0xff]  ;;  %656 = vst [vmem:[%s3152_s7 + $0x338] sm:$0xff] %v655_v39 }
  0x7f   : > { %658 = vst [vmem:[%s3152_s7 + $0x340] sm:$0xff] %v657_v40  ;;  %v659_v41 = vld [vmem:[%s3147_s6 + $0xd20] sm:$0xff] }
  0x80   : > { %v661_v42 = vld [vmem:[%s3147_s6 + $0xd40] sm:$0xff]  ;;  %660 = vst [vmem:[%s3152_s7 + $0x348] sm:$0xff] %v659_v41 }
  0x81   : > { %v663_v43 = vld [vmem:[%s3147_s6 + $0xd60] sm:$0xff]  ;;  %662 = vst [vmem:[%s3152_s7 + $0x350] sm:$0xff] %v661_v42 }
  0x82   : > { %664 = vst [vmem:[%s3152_s7 + $0x358] sm:$0xff] %v663_v43  ;;  %v665_v44 = vld [vmem:[%s3147_s6 + $0xd80] sm:$0xff] }
  0x83   : > { %v667_v45 = vld [vmem:[%s3147_s6 + $0xda0] sm:$0xff]  ;;  %666 = vst [vmem:[%s3152_s7 + $0x360] sm:$0xff] %v665_v44 }
  0x84   : > { %v669_v46 = vld [vmem:[%s3147_s6 + $0xdc0] sm:$0xff]  ;;  %668 = vst [vmem:[%s3152_s7 + $0x368] sm:$0xff] %v667_v45 }
  0x85   : > { %670 = vst [vmem:[%s3152_s7 + $0x370] sm:$0xff] %v669_v46  ;;  %v671_v47 = vld [vmem:[%s3147_s6 + $0xde0] sm:$0xff] }
  0x86   : > { %v673_v48 = vld [vmem:[%s3147_s6 + $0xe00] sm:$0xff]  ;;  %672 = vst [vmem:[%s3152_s7 + $0x378] sm:$0xff] %v671_v47 }
  0x87   : > { %v675_v49 = vld [vmem:[%s3147_s6 + $0xe20] sm:$0xff]  ;;  %674 = vst [vmem:[%s3152_s7 + $0x380] sm:$0xff] %v673_v48 }
  0x88   : > { %676 = vst [vmem:[%s3152_s7 + $0x388] sm:$0xff] %v675_v49  ;;  %v677_v50 = vld [vmem:[%s3147_s6 + $0xe40] sm:$0xff] }
  0x89   : > { %v679_v51 = vld [vmem:[%s3147_s6 + $0xe60] sm:$0xff]  ;;  %678 = vst [vmem:[%s3152_s7 + $0x390] sm:$0xff] %v677_v50 }
  0x8a   : > { %v681_v52 = vld [vmem:[%s3147_s6 + $0xe80] sm:$0xff]  ;;  %680 = vst [vmem:[%s3152_s7 + $0x398] sm:$0xff] %v679_v51 }
  0x8b   : > { %682 = vst [vmem:[%s3152_s7 + $0x3a0] sm:$0xff] %v681_v52  ;;  %v683_v53 = vld [vmem:[%s3147_s6 + $0xea0] sm:$0xff] }
  0x8c   : > { %v685_v54 = vld [vmem:[%s3147_s6 + $0xec0] sm:$0xff]  ;;  %684 = vst [vmem:[%s3152_s7 + $0x3a8] sm:$0xff] %v683_v53 }
  0x8d   : > { %v687_v55 = vld [vmem:[%s3147_s6 + $0xee0] sm:$0xff]  ;;  %686 = vst [vmem:[%s3152_s7 + $0x3b0] sm:$0xff] %v685_v54 }
  0x8e   : > { %688 = vst [vmem:[%s3152_s7 + $0x3b8] sm:$0xff] %v687_v55  ;;  %v689_v56 = vld [vmem:[%s3147_s6 + $0xf00] sm:$0xff] }
  0x8f   : > { %v691_v57 = vld [vmem:[%s3147_s6 + $0xf20] sm:$0xff]  ;;  %690 = vst [vmem:[%s3152_s7 + $0x3c0] sm:$0xff] %v689_v56 }
  0x90   : > { %v693_v58 = vld [vmem:[%s3147_s6 + $0xf40] sm:$0xff]  ;;  %692 = vst [vmem:[%s3152_s7 + $0x3c8] sm:$0xff] %v691_v57 }
  0x91   : > { %694 = vst [vmem:[%s3152_s7 + $0x3d0] sm:$0xff] %v693_v58  ;;  %v695_v59 = vld [vmem:[%s3147_s6 + $0xf60] sm:$0xff] }
  0x92   : > { %v697_v60 = vld [vmem:[%s3147_s6 + $0xf80] sm:$0xff]  ;;  %696 = vst [vmem:[%s3152_s7 + $0x3d8] sm:$0xff] %v695_v59 }
  0x93   : > { %v699_v61 = vld [vmem:[%s3147_s6 + $0xfa0] sm:$0xff]  ;;  %698 = vst [vmem:[%s3152_s7 + $0x3e0] sm:$0xff] %v697_v60 }
  0x94   : > { %700 = vst [vmem:[%s3152_s7 + $0x3e8] sm:$0xff] %v699_v61  ;;  %v701_v62 = vld [vmem:[%s3147_s6 + $0xfc0] sm:$0xff] }
  0x95   : > { %v703_v63 = vld [vmem:[%s3147_s6 + $0xfe0] sm:$0xff]  ;;  %702 = vst [vmem:[%s3152_s7 + $0x3f0] sm:$0xff] %v701_v62 }
  0x96   : > { %704 = vst [vmem:[%s3152_s7 + $0x3f8] sm:$0xff] %v703_v63 }
  0x97 PF: > { %p2417_p10 = scmp.ge.s32.totalorder %s3061_s18, 1  ;;  %p717_p11 = scmp.lt.s32.totalorder %s3061_s18, 5 }
  0x99   : > { %p718_p12 = pnand %p2417_p10, %p717_p11 }
  0x9a   : > { %s3410_s8 = sand.u32 (!%p718_p12), 1, %s3053_s16   ;;  %v760_v0 = vld [vmem:[%s3949_s0] sm:$0xff] (!%p718_p12)  ;;  %v891_v1 = vlaneseq (!%p718_p12)  ;;  %v1765_v2 = vld [vmem:[%s3950_s1 + $0x10] sm:$0xff] (!%p718_p12)  ;;  %v3063_v3 = vmov (!%p718_p12), 1966171168   ;;  %v3064_v5 = vmov (!%p718_p12), 0  }
  0x9b   : > { %721 = sbr.rel (%p718_p12) target bundleno = 608 (0x260), region = 70  ;;  %s2418_s13 = sshll.u32 (!%p718_p12), %s3410_s8, 10  ;;  %v904_v4 = vunpack.c.l.s4 (!%p718_p12), %v3063_v3  ;;  %2677 = vset.pattern.permute.xlu1 (!%p718_p12), %v3064_v5  ;;  %2676 = vset.pattern.permute.xlu0 (!%p718_p12), %v3064_v5  ;;  %v1763_v6 = vld [vmem:[%s3950_s1] sm:$0xff] (!%p718_p12)  ;;  %v1766_v8 = vld [vmem:[%s3950_s1 + $0x18] sm:$0xff] (!%p718_p12)  ;;  %v902_v11 = vcombine.high (!%p718_p12), %v760_v0, %v760_v0  ;;  %v1764_v12 = vld [vmem:[%s3950_s1 + $0x8] sm:$0xff] (!%p718_p12) }
  0x9c   : > { %v3422_v7 = vshrl.u32 (!%p718_p12), %v891_v1, 7  ;;  %1832 = vperm.xlu1 (!%p718_p12), %2677, %v1765_v2   ;;  %1822 = vperm.xlu0 (!%p718_p12), %2676, %v1763_v6   ;;  %s3427_s27 = scalar_lea.vmem (!%p718_p12), [#allocation2], %s2418_s13  ;;  %v1768_v17 = vld [vmem:[%s3950_s1 + $0x28] sm:$0xff] (!%p718_p12)  ;;  %v1767_v27 = vld [vmem:[%s3950_s1 + $0x20] sm:$0xff] (!%p718_p12)  ;;  %v1770_v28 = vld [vmem:[%s3950_s1 + $0x38] sm:$0xff] (!%p718_p12)  ;;  %s2419_s29 = sshll.u32 (!%p718_p12), %s3410_s8, 9 }
  0x9d   : > { %v2678_v9 = vld [vmem:[%s3427_s27 + $0x4] ss:$8 sps:$4 sm:$0xff] (!%p718_p12)   ;;  %v905_v10 = vunpack.c.0.s8 (!%p718_p12), %v904_v4  ;;  %v2682_v14 = vld [vmem:[%s3427_s27] ss:$8 sps:$4 sm:$0xff] (!%p718_p12)   ;;  %v2684_v18 = vld [vmem:[%s3427_s27 + $0x14] ss:$8 sps:$4 sm:$0xff] (!%p718_p12)  }
  0x9e   : > { %v2680_v13 = vld [vmem:[%s3427_s27 + $0x204] ss:$8 sps:$4 sm:$0xff] (!%p718_p12)   ;;  %1599 = vmatprep.subr.bf16.mxu1 (!%p718_p12), %v2678_v9  ;;  %v2683_v15 = vld [vmem:[%s3427_s27 + $0x200] ss:$8 sps:$4 sm:$0xff] (!%p718_p12)   ;;  %v2686_v19 = vld [vmem:[%s3427_s27 + $0x214] ss:$8 sps:$4 sm:$0xff] (!%p718_p12)  }
  0x9f   : > { %v3437_v16 = vsub.s32 (!%p718_p12), %v905_v10, %v3422_v7  ;;  %1681 = vmatprep.subr.bf16.mxu0 (!%p718_p12), %v2680_v13  ;;  %1600 = vmatpush1.bf16.msra.mxu1 (!%p718_p12), %v2682_v14  ;;  %v2688_v20 = vld [vmem:[%s3427_s27 + $0x10] ss:$8 sps:$4 sm:$0xff] (!%p718_p12)   ;;  %v2690_v24 = vld [vmem:[%s3427_s27 + $0x24] ss:$8 sps:$4 sm:$0xff] (!%p718_p12)   ;;  %v2694_v30 = vld [vmem:[%s3427_s27 + $0x20] ss:$8 sps:$4 sm:$0xff] (!%p718_p12)  }
  0xa0   : > { %1837 = vperm.xlu1 (!%p718_p12), %2677, %v1766_v8   ;;  %1682 = vmatpush1.bf16.msra.mxu0 (!%p718_p12), %v2683_v15  ;;  %v2689_v23 = vld [vmem:[%s3427_s27 + $0x210] ss:$8 sps:$4 sm:$0xff] (!%p718_p12)   ;;  %v2692_v29 = vld [vmem:[%s3427_s27 + $0x224] ss:$8 sps:$4 sm:$0xff] (!%p718_p12)   ;;  %v2695_v31 = vld [vmem:[%s3427_s27 + $0x220] ss:$8 sps:$4 sm:$0xff] (!%p718_p12)  }
  0xa1   : > { %v3446_v21 = vrot.slane (!%p718_p12), %v760_v0, %v3437_v16  ;;  %v3449_v22 = vrot.slane (!%p718_p12), %v902_v11, %v3437_v16  ;;  %1601 = vmatprep.subr.bf16.mxu1 (!%p718_p12), %v2684_v18  ;;  %1827 = vperm.xlu0 (!%p718_p12), %2676, %v1764_v12   ;;  %v2696_v32 = vld [vmem:[%s3427_s27 + $0x34] ss:$8 sps:$4 sm:$0xff] (!%p718_p12)   ;;  %v2700_v36 = vld [vmem:[%s3427_s27 + $0x30] ss:$8 sps:$4 sm:$0xff] (!%p718_p12)   ;;  %v2702_v38 = vld [vmem:[%s3427_s27 + $0x44] ss:$8 sps:$4 sm:$0xff] (!%p718_p12)  }
  0xa2   : > { %1683 = vmatprep.subr.bf16.mxu0 %v2686_v19  ;;  %v2698_v35 = vld [vmem:[%s3427_s27 + $0x234] ss:$8 sps:$4 sm:$0xff]   ;;  %v2701_v37 = vld [vmem:[%s3427_s27 + $0x230] ss:$8 sps:$4 sm:$0xff]   ;;  %v2704_v39 = vld [vmem:[%s3427_s27 + $0x244] ss:$8 sps:$4 sm:$0xff]  }
  0xa3   : > { %v917_v25 = vcombine.high %v3446_v21, %v3446_v21  ;;  %v918_v26 = vcombine.high %v3449_v22, %v3449_v22  ;;  %1602 = vmatpush1.bf16.msra.mxu1 %v2688_v20  ;;  %v2706_v40 = vld [vmem:[%s3427_s27 + $0x40] ss:$8 sps:$4 sm:$0xff]   ;;  %v2708_v42 = vld [vmem:[%s3427_s27 + $0x54] ss:$8 sps:$4 sm:$0xff]   ;;  %v2712_v44 = vld [vmem:[%s3427_s27 + $0x50] ss:$8 sps:$4 sm:$0xff]  }
  0xa4   : > { %1847 = vperm.xlu1 %2677, %v1768_v17   ;;  %1684 = vmatpush1.bf16.msra.mxu0 %v2689_v23  ;;  %v2707_v41 = vld [vmem:[%s3427_s27 + $0x240] ss:$8 sps:$4 sm:$0xff]   ;;  %v2710_v43 = vld [vmem:[%s3427_s27 + $0x254] ss:$8 sps:$4 sm:$0xff]   ;;  %v2713_v45 = vld [vmem:[%s3427_s27 + $0x250] ss:$8 sps:$4 sm:$0xff]  }
  0xa5   : > { %v3468_v33 = vrot.slane %v917_v25, %v3437_v16  ;;  %v3471_v34 = vrot.slane %v918_v26, %v3437_v16  ;;  %1603 = vmatprep.subr.bf16.mxu1 %v2690_v24  ;;  %1685 = vmatprep.subr.bf16.mxu0 %v2692_v29  ;;  %v2714_v46 = vld [vmem:[%s3427_s27 + $0x64] ss:$8 sps:$4 sm:$0xff]   ;;  %v2718_v48 = vld [vmem:[%s3427_s27 + $0x60] ss:$8 sps:$4 sm:$0xff]   ;;  %v2720_v50 = vld [vmem:[%s3427_s27 + $0x74] ss:$8 sps:$4 sm:$0xff]  }
  0xa6   : > { %1842 = vperm.xlu0 %2676, %v1767_v27   ;;  %v2716_v47 = vld [vmem:[%s3427_s27 + $0x264] ss:$8 sps:$4 sm:$0xff]   ;;  %v2719_v49 = vld [vmem:[%s3427_s27 + $0x260] ss:$8 sps:$4 sm:$0xff]   ;;  %v2722_v51 = vld [vmem:[%s3427_s27 + $0x274] ss:$8 sps:$4 sm:$0xff]  }
  0xa7   : > { %1631 = vmatprep.mubr.bf16.mxu1 %v3468_v33  ;;  %1713 = vmatprep.mubr.bf16.mxu0 %v3471_v34  ;;  %v2724_v52 = vld [vmem:[%s3427_s27 + $0x70] ss:$8 sps:$4 sm:$0xff]   ;;  %v2726_v54 = vld [vmem:[%s3427_s27 + $0x84] ss:$8 sps:$4 sm:$0xff]   ;;  %v2730_v56 = vld [vmem:[%s3427_s27 + $0x80] ss:$8 sps:$4 sm:$0xff]  }
  0xa8   : > { %1857 = vperm.xlu1 %2677, %v1770_v28   ;;  %1604 = vmatpush1.bf16.msra.mxu1 %v2694_v30  ;;  %v2725_v53 = vld [vmem:[%s3427_s27 + $0x270] ss:$8 sps:$4 sm:$0xff]   ;;  %v2728_v55 = vld [vmem:[%s3427_s27 + $0x284] ss:$8 sps:$4 sm:$0xff]   ;;  %v2731_v57 = vld [vmem:[%s3427_s27 + $0x280] ss:$8 sps:$4 sm:$0xff]   ;;  %v3532_v30 = vrot.slane %v3446_v21, %v3437_v16  ;;  %v950_v21 = vcombine.high %v3471_v34, %v3471_v34 }
  0xa9   : > { %1686 = vmatpush1.bf16.msra.mxu0 %v2695_v31  ;;  %1605 = vmatprep.subr.bf16.mxu1 %v2696_v32  ;;  %v2732_v58 = vld [vmem:[%s3427_s27 + $0x94] ss:$8 sps:$4 sm:$0xff]   ;;  %v2736_v60 = vld [vmem:[%s3427_s27 + $0x90] ss:$8 sps:$4 sm:$0xff]   ;;  %v2738_v62 = vld [vmem:[%s3427_s27 + $0xa4] ss:$8 sps:$4 sm:$0xff]   ;;  %v3536_v31 = vrot.slane %v3449_v22, %v3437_v16 }
  0xaa   : > { %1687 = vmatprep.subr.bf16.mxu0 %v2698_v35  ;;  %v2734_v59 = vld [vmem:[%s3427_s27 + $0x294] ss:$8 sps:$4 sm:$0xff]   ;;  %v2737_v61 = vld [vmem:[%s3427_s27 + $0x290] ss:$8 sps:$4 sm:$0xff]   ;;  %v2740_v63 = vld [vmem:[%s3427_s27 + $0x2a4] ss:$8 sps:$4 sm:$0xff]  }
  0xab   : > { %v2742_v0 = vld [vmem:[%s3427_s27 + $0xa0] ss:$8 sps:$4 sm:$0xff]   ;;  %v2744_v2 = vld [vmem:[%s3427_s27 + $0xb4] ss:$8 sps:$4 sm:$0xff]   ;;  %v2748_v4 = vld [vmem:[%s3427_s27 + $0xb0] ss:$8 sps:$4 sm:$0xff]  }
  0xac   : > { %1606 = vmatpush1.bf16.msra.mxu1 %v2700_v36  ;;  %v2743_v1 = vld [vmem:[%s3427_s27 + $0x2a0] ss:$8 sps:$4 sm:$0xff]   ;;  %v2746_v3 = vld [vmem:[%s3427_s27 + $0x2b4] ss:$8 sps:$4 sm:$0xff]   ;;  %v2749_v5 = vld [vmem:[%s3427_s27 + $0x2b0] ss:$8 sps:$4 sm:$0xff]   ;;  %v949_v36 = vcombine.high %v3468_v33, %v3468_v33 }
  0xad   : > { %1688 = vmatpush1.bf16.msra.mxu0 %v2701_v37  ;;  %1607 = vmatprep.subr.bf16.mxu1 %v2702_v38  ;;  %v2750_v6 = vld [vmem:[%s3427_s27 + $0xc4] ss:$8 sps:$4 sm:$0xff]   ;;  %v2754_v9 = vld [vmem:[%s3427_s27 + $0xc0] ss:$8 sps:$4 sm:$0xff]   ;;  %v2756_v11 = vld [vmem:[%s3427_s27 + $0xd4] ss:$8 sps:$4 sm:$0xff]  }
  0xae   : > { %1689 = vmatprep.subr.bf16.mxu0 %v2704_v39  ;;  %v2752_v8 = vld [vmem:[%s3427_s27 + $0x2c4] ss:$8 sps:$4 sm:$0xff]   ;;  %v2755_v10 = vld [vmem:[%s3427_s27 + $0x2c0] ss:$8 sps:$4 sm:$0xff]   ;;  %v2758_v12 = vld [vmem:[%s3427_s27 + $0x2d4] ss:$8 sps:$4 sm:$0xff]  }
  0xaf   : > { %v2760_v13 = vld [vmem:[%s3427_s27 + $0xd0] ss:$8 sps:$4 sm:$0xff]   ;;  %v2762_v15 = vld [vmem:[%s3427_s27 + $0xe4] ss:$8 sps:$4 sm:$0xff]   ;;  %v2766_v18 = vld [vmem:[%s3427_s27 + $0xe0] ss:$8 sps:$4 sm:$0xff]  }
  0xb0   : > { %1608 = vmatpush1.bf16.msra.mxu1 %v2706_v40  ;;  %v2761_v14 = vld [vmem:[%s3427_s27 + $0x2d0] ss:$8 sps:$4 sm:$0xff]   ;;  %v2764_v17 = vld [vmem:[%s3427_s27 + $0x2e4] ss:$8 sps:$4 sm:$0xff]   ;;  %v2767_v19 = vld [vmem:[%s3427_s27 + $0x2e0] ss:$8 sps:$4 sm:$0xff]  }
  0xb1   : > { %1690 = vmatpush1.bf16.msra.mxu0 %v2707_v41  ;;  %1609 = vmatprep.subr.bf16.mxu1 %v2708_v42  ;;  %v2768_v20 = vld [vmem:[%s3427_s27 + $0xf4] ss:$8 sps:$4 sm:$0xff]   ;;  %v2772_v24 = vld [vmem:[%s3427_s27 + $0xf0] ss:$8 sps:$4 sm:$0xff]   ;;  %v2776_v26 = vld [vmem:[%s3427_s27 + $0x104] ss:$8 sps:$4 sm:$0xff]  }
  0xb2   : > { %1691 = vmatprep.subr.bf16.mxu0 %v2710_v43  ;;  %v2770_v23 = vld [vmem:[%s3427_s27 + $0x2f4] ss:$8 sps:$4 sm:$0xff]   ;;  %v2773_v25 = vld [vmem:[%s3427_s27 + $0x2f0] ss:$8 sps:$4 sm:$0xff]   ;;  %v2780_v27 = vld [vmem:[%s3427_s27 + $0x304] ss:$8 sps:$4 sm:$0xff]  }
  0xb3   : > { %v2774_v28 = vld [vmem:[%s3427_s27 + $0x100] ss:$8 sps:$4 sm:$0xff]   ;;  %v2783_v32 = vld [vmem:[%s3427_s27 + $0x114] ss:$8 sps:$4 sm:$0xff]   ;;  %v2781_v22 = vld [vmem:[%s3427_s27 + $0x110] ss:$8 sps:$4 sm:$0xff]  }
  0xb4   : > { %1610 = vmatpush1.bf16.msra.mxu1 %v2712_v44  ;;  %v2778_v29 = vld [vmem:[%s3427_s27 + $0x300] ss:$8 sps:$4 sm:$0xff]   ;;  %v2786_v35 = vld [vmem:[%s3427_s27 + $0x314] ss:$8 sps:$4 sm:$0xff]   ;;  %v2784_v37 = vld [vmem:[%s3427_s27 + $0x310] ss:$8 sps:$4 sm:$0xff]  }
  0xb5   : > { %1692 = vmatpush1.bf16.msra.mxu0 %v2713_v45  ;;  %1611 = vmatprep.subr.bf16.mxu1 %v2714_v46  ;;  %v2789_v38 = vld [vmem:[%s3427_s27 + $0x124] ss:$8 sps:$4 sm:$0xff]   ;;  %v2787_v34 = vld [vmem:[%s3427_s27 + $0x120] ss:$8 sps:$4 sm:$0xff]   ;;  %v2795_v40 = vld [vmem:[%s3427_s27 + $0x134] ss:$8 sps:$4 sm:$0xff]  }
  0xb6   : > { %1693 = vmatprep.subr.bf16.mxu0 %v2716_v47  ;;  %v2792_v33 = vld [vmem:[%s3427_s27 + $0x324] ss:$8 sps:$4 sm:$0xff]   ;;  %v2790_v39 = vld [vmem:[%s3427_s27 + $0x320] ss:$8 sps:$4 sm:$0xff]   ;;  %v2798_v41 = vld [vmem:[%s3427_s27 + $0x334] ss:$8 sps:$4 sm:$0xff]  }
  0xb7   : > { %v2793_v42 = vld [vmem:[%s3427_s27 + $0x130] ss:$8 sps:$4 sm:$0xff]   ;;  %v2801_v44 = vld [vmem:[%s3427_s27 + $0x144] ss:$8 sps:$4 sm:$0xff]   ;;  %v2799_v46 = vld [vmem:[%s3427_s27 + $0x140] ss:$8 sps:$4 sm:$0xff]  }
  0xb8   : > { %1612 = vmatpush1.bf16.msra.mxu1 %v2718_v48  ;;  %v2796_v43 = vld [vmem:[%s3427_s27 + $0x330] ss:$8 sps:$4 sm:$0xff]   ;;  %v2804_v45 = vld [vmem:[%s3427_s27 + $0x344] ss:$8 sps:$4 sm:$0xff]   ;;  %v2802_v47 = vld [vmem:[%s3427_s27 + $0x340] ss:$8 sps:$4 sm:$0xff]  }
  0xb9   : > { %1694 = vmatpush1.bf16.msra.mxu0 %v2719_v49  ;;  %1613 = vmatprep.subr.bf16.mxu1 %v2720_v50  ;;  %v1769_v48 = vld [vmem:[%s3950_s1 + $0x30] sm:$0xff]  ;;  %s3749_s30 = scalar_lea.vmem [#allocation3], %s2419_s29  ;;  %s2619_s5 = sshll.u32 %s3115_s19, 8 }
  0xba   : > { %1695 = vmatprep.subr.bf16.mxu0 %v2722_v51  ;;  %v2807_v49 = vld [vmem:[%s3427_s27 + $0x154] ss:$8 sps:$4 sm:$0xff]   ;;  %v2805_v51 = vld [vmem:[%s3427_s27 + $0x150] ss:$8 sps:$4 sm:$0xff]   ;;  %1852 = vperm.xlu0 %2676, %v1769_v48   ;;  %v2862_v48 = vld [vmem:[%s3427_s27 + $0x3e0] ss:$8 sps:$4 sm:$0xff]  }
  0xbb   : > { %v2810_v50 = vld [vmem:[%s3427_s27 + $0x354] ss:$8 sps:$4 sm:$0xff]   ;;  %s2334_s6 = sshll.u32 %s3749_s30, 4  ;;  %s2321_s10 = scalar_lea.sflag [#allocation4], %s3410_s8  ;;  %s3903_s6 = int_to_ptr.vmem [resolvable:$true] %s2334_s6 }
  0xbc   : > { %1614 = vmatpush1.bf16.msra.mxu1 %v2724_v52  ;;  %v1772_v52 = vld [vmem:[%s3950_s1 + $0x48] sm:$0xff]  ;;  %s2999_s11 = scalar_lea.vmem %s3903_s6, 8192  ;;  %s3065_s12 = smov [#allocation3]  }
  0xbd   : > { %1696 = vmatpush1.bf16.msra.mxu0 %v2725_v53  ;;  %1615 = vmatprep.subr.bf16.mxu1 %v2726_v54  ;;  %v1771_v53 = vld [vmem:[%s3950_s1 + $0x40] sm:$0xff]  ;;  %v2808_v54 = vld [vmem:[%s3427_s27 + $0x350] ss:$8 sps:$4 sm:$0xff]   ;;  %p3000_p0 = scmp.ne.s32.totalorder %s3903_s6, %s2999_s11  ;;  %s3003_s13 = sshll.u32 %s3065_s12, 4  ;;  %s3004_s13 = int_to_ptr.vmem [resolvable:$false] %s3003_s13 }
  0xbe   : > { %1697 = vmatprep.subr.bf16.mxu0 %v2728_v55  ;;  %v2813_v55 = vld [vmem:[%s3427_s27 + $0x164] ss:$8 sps:$4 sm:$0xff]   ;;  %1867 = vperm.xlu1 %2677, %v1772_v52   ;;  %s3005_s14 = scalar_lea.vmem %s3004_s13, 16384  ;;  %p3006_p3 = scmp.lt.s32.totalorder %s3903_s6, %s3004_s13 }
  0xbf   : > { %1862 = vperm.xlu0 %2676, %v1771_v53   ;;  %v1791_v52 = vld [vmem:[%s3950_s1 + $0xe0] sm:$0xff]  ;;  %v2865_v53 = vld [vmem:[%s3427_s27 + $0x1f0] ss:$8 sps:$4 sm:$0xff]   ;;  %p3001_p1 = pnand %p3000_p0, %p3133_p6  ;;  %p3007_p4 = scmp.lt.s32.totalorder %s3005_s14, %s2999_s11 }
  0xc0   : > { %1616 = vmatpush1.bf16.msra.mxu1 %v2730_v56  ;;  %v2816_v56 = vld [vmem:[%s3427_s27 + $0x364] ss:$8 sps:$4 sm:$0xff]  }
  0xc1   : > { %1698 = vmatpush1.bf16.msra.mxu0 %v2731_v57  ;;  %1617 = vmatprep.subr.bf16.mxu1 %v2732_v58  ;;  %v1774_v57 = vld [vmem:[%s3950_s1 + $0x58] sm:$0xff]  ;;  %v1773_v58 = vld [vmem:[%s3950_s1 + $0x50] sm:$0xff]  ;;  %p3002_p2 = pneg %p3001_p1  ;;  %p3008_p5 = por %p3007_p4, %p3006_p3 }
  0xc2   : > { %1699 = vmatprep.subr.bf16.mxu0 %v2734_v59  ;;  %v2811_v59 = vld [vmem:[%s3427_s27 + $0x160] ss:$8 sps:$4 sm:$0xff]   ;;  %1877 = vperm.xlu1 %2677, %v1774_v57   ;;  %v1794_v57 = vld [vmem:[%s3950_s1 + $0xf8] sm:$0xff] }
  0xc3   : > { %1872 = vperm.xlu0 %2676, %v1773_v58   ;;  %v1793_v58 = vld [vmem:[%s3950_s1 + $0xf0] sm:$0xff]  ;;  %p3009_p7 = pnand %p3008_p5, %p3002_p2 }
  0xc4   : > { %1618 = vmatpush1.bf16.msra.mxu1 %v2736_v60  ;;  %v2814_v60 = vld [vmem:[%s3427_s27 + $0x360] ss:$8 sps:$4 sm:$0xff]  }
  0xc5   : > { %1700 = vmatpush1.bf16.msra.mxu0 %v2737_v61  ;;  %1619 = vmatprep.subr.bf16.mxu1 %v2738_v62  ;;  %v2819_v61 = vld [vmem:[%s3427_s27 + $0x174] ss:$8 sps:$4 sm:$0xff]  }
  0xc6   : > { %1701 = vmatprep.subr.bf16.mxu0 %v2740_v63  ;;  %v2822_v62 = vld [vmem:[%s3427_s27 + $0x374] ss:$8 sps:$4 sm:$0xff]   ;;  %v1776_v63 = vld [vmem:[%s3950_s1 + $0x68] sm:$0xff] }
  0xc7   : > { %1887 = vperm.xlu1 %2677, %v1776_v63  }
  0xc8   : > { %1620 = vmatpush1.bf16.msra.mxu1 %v2742_v0  ;;  %v1775_v0 = vld [vmem:[%s3950_s1 + $0x60] sm:$0xff] }
  0xc9   : > { %1702 = vmatpush1.bf16.msra.mxu0 %v2743_v1  ;;  %1621 = vmatprep.subr.bf16.mxu1 %v2744_v2  ;;  %v2817_v1 = vld [vmem:[%s3427_s27 + $0x170] ss:$8 sps:$4 sm:$0xff]  }
  0xca   : > { %1703 = vmatprep.subr.bf16.mxu0 %v2746_v3  ;;  %v2820_v2 = vld [vmem:[%s3427_s27 + $0x370] ss:$8 sps:$4 sm:$0xff]   ;;  %v2825_v3 = vld [vmem:[%s3427_s27 + $0x184] ss:$8 sps:$4 sm:$0xff]   ;;  %1882 = vperm.xlu0 %2676, %v1775_v0  }
  0xcc   : > { %1622 = vmatpush1.bf16.msra.mxu1 %v2748_v4  ;;  %v2828_v4 = vld [vmem:[%s3427_s27 + $0x384] ss:$8 sps:$4 sm:$0xff]  }
  0xcd   : > { %1704 = vmatpush1.bf16.msra.mxu0 %v2749_v5  ;;  %1623 = vmatprep.subr.bf16.mxu1 %v2750_v6  ;;  %v1778_v5 = vld [vmem:[%s3950_s1 + $0x78] sm:$0xff]  ;;  %v1777_v6 = vld [vmem:[%s3950_s1 + $0x70] sm:$0xff] }
  0xce   : > { %1705 = vmatprep.subr.bf16.mxu0 %v2752_v8  ;;  %v2823_v8 = vld [vmem:[%s3427_s27 + $0x180] ss:$8 sps:$4 sm:$0xff]   ;;  %1897 = vperm.xlu1 %2677, %v1778_v5  }
  0xcf   : > { %1892 = vperm.xlu0 %2676, %v1777_v6  }
  0xd0   : > { %1624 = vmatpush1.bf16.msra.mxu1 %v2754_v9  ;;  %v2826_v9 = vld [vmem:[%s3427_s27 + $0x380] ss:$8 sps:$4 sm:$0xff]  }
  0xd1   : > { %1706 = vmatpush1.bf16.msra.mxu0 %v2755_v10  ;;  %1625 = vmatprep.subr.bf16.mxu1 %v2756_v11  ;;  %v2831_v10 = vld [vmem:[%s3427_s27 + $0x194] ss:$8 sps:$4 sm:$0xff]  }
  0xd2   : > { %1707 = vmatprep.subr.bf16.mxu0 %v2758_v12  ;;  %v2834_v11 = vld [vmem:[%s3427_s27 + $0x394] ss:$8 sps:$4 sm:$0xff]   ;;  %v1780_v12 = vld [vmem:[%s3950_s1 + $0x88] sm:$0xff] }
  0xd3   : > { %1907 = vperm.xlu1 %2677, %v1780_v12  }
  0xd4   : > { %1626 = vmatpush1.bf16.msra.mxu1 %v2760_v13  ;;  %v1779_v13 = vld [vmem:[%s3950_s1 + $0x80] sm:$0xff] }
  0xd5   : > { %1708 = vmatpush1.bf16.msra.mxu0 %v2761_v14  ;;  %1627 = vmatprep.subr.bf16.mxu1 %v2762_v15  ;;  %v2829_v14 = vld [vmem:[%s3427_s27 + $0x190] ss:$8 sps:$4 sm:$0xff]  }
  0xd6   : > { %1709 = vmatprep.subr.bf16.mxu0 %v2764_v17  ;;  %v2832_v15 = vld [vmem:[%s3427_s27 + $0x390] ss:$8 sps:$4 sm:$0xff]   ;;  %v2837_v17 = vld [vmem:[%s3427_s27 + $0x1a4] ss:$8 sps:$4 sm:$0xff]   ;;  %1902 = vperm.xlu0 %2676, %v1779_v13  }
  0xd8   : > { %1628 = vmatpush1.bf16.msra.mxu1 %v2766_v18  ;;  %v2840_v18 = vld [vmem:[%s3427_s27 + $0x3a4] ss:$8 sps:$4 sm:$0xff]  }
  0xd9   : > { %1710 = vmatpush1.bf16.msra.mxu0 %v2767_v19  ;;  %1629 = vmatprep.subr.bf16.mxu1 %v2768_v20  ;;  %v1782_v19 = vld [vmem:[%s3950_s1 + $0x98] sm:$0xff]  ;;  %v1781_v20 = vld [vmem:[%s3950_s1 + $0x90] sm:$0xff] }
  0xda   : > { %1711 = vmatprep.subr.bf16.mxu0 %v2770_v23  ;;  %v2835_v23 = vld [vmem:[%s3427_s27 + $0x1a0] ss:$8 sps:$4 sm:$0xff]   ;;  %1917 = vperm.xlu1 %2677, %v1782_v19  }
  0xdb   : > { %1912 = vperm.xlu0 %2676, %v1781_v20  }
  0xdc   : > { %1630 = vmatpush1.bf16.msra.mxu1 %v2772_v24  ;;  %v2838_v24 = vld [vmem:[%s3427_s27 + $0x3a0] ss:$8 sps:$4 sm:$0xff]  }
  0xdd   : > { %1712 = vmatpush1.bf16.msra.mxu0 %v2773_v25  ;;  %1640 = vmatprep.subr.bf16.mxu1 %v2776_v26  ;;  %v2843_v25 = vld [vmem:[%s3427_s27 + $0x1b4] ss:$8 sps:$4 sm:$0xff]  }
  0xde   : > { %1722 = vmatprep.subr.bf16.mxu0 %v2780_v27  ;;  %v2846_v26 = vld [vmem:[%s3427_s27 + $0x3b4] ss:$8 sps:$4 sm:$0xff]   ;;  %v1784_v27 = vld [vmem:[%s3950_s1 + $0xa8] sm:$0xff] }
  0xdf   : > { %1632 = vmatmul.mubr.bf16.vlgmr.msra.gmra.mrb[0].mxu1 %v3532_v30  ;;  %1927 = vperm.xlu1 %2677, %v1784_v27  }
  0xe0   : > { %1714 = vmatmul.mubr.bf16.vlgmr.msra.gmra.mrb[0].mxu0 %v3536_v31  ;;  %1641 = vmatpush1.bf16.msra.mxu1 %v2774_v28  ;;  %v1783_v28 = vld [vmem:[%s3950_s1 + $0xa0] sm:$0xff] }
  0xe1   : > { %1723 = vmatpush1.bf16.msra.mxu0 %v2778_v29  ;;  %1642 = vmatprep.subr.bf16.mxu1 %v2783_v32  ;;  %v2841_v29 = vld [vmem:[%s3427_s27 + $0x1b0] ss:$8 sps:$4 sm:$0xff]  }
  0xe2   : > { %1724 = vmatprep.subr.bf16.mxu0 %v2786_v35  ;;  %1672 = vmatprep.mubr.bf16.mxu1 %v949_v36  ;;  %v2844_v32 = vld [vmem:[%s3427_s27 + $0x3b0] ss:$8 sps:$4 sm:$0xff]   ;;  %v2849_v35 = vld [vmem:[%s3427_s27 + $0x1c4] ss:$8 sps:$4 sm:$0xff]  }
  0xe3   : > { %1754 = vmatprep.mubr.bf16.mxu0 %v950_v21  ;;  %v2852_v36 = vld [vmem:[%s3427_s27 + $0x3c4] ss:$8 sps:$4 sm:$0xff]   ;;  %1922 = vperm.xlu0 %2676, %v1783_v28   ;;  %v1786_v21 = vld [vmem:[%s3950_s1 + $0xb8] sm:$0xff] }
  0xe4   : > { %1643 = vmatpush1.bf16.msra.mxu1 %v2781_v22  ;;  %v1785_v22 = vld [vmem:[%s3950_s1 + $0xb0] sm:$0xff]  ;;  %1937 = vperm.xlu1 %2677, %v1786_v21  }
  0xe5   : > { %1725 = vmatpush1.bf16.msra.mxu0 %v2784_v37  ;;  %1644 = vmatprep.subr.bf16.mxu1 %v2789_v38  ;;  %v2847_v37 = vld [vmem:[%s3427_s27 + $0x1c0] ss:$8 sps:$4 sm:$0xff]  }
  0xe6   : > { %1726 = vmatprep.subr.bf16.mxu0 %v2792_v33  ;;  %v2850_v38 = vld [vmem:[%s3427_s27 + $0x3c0] ss:$8 sps:$4 sm:$0xff]   ;;  %v2855_v33 = vld [vmem:[%s3427_s27 + $0x1d4] ss:$8 sps:$4 sm:$0xff]  }
  0xe7   : > { %1932 = vperm.xlu0 %2676, %v1785_v22  }
  0xe8   : > { %1645 = vmatpush1.bf16.msra.mxu1 %v2787_v34  ;;  %v2858_v34 = vld [vmem:[%s3427_s27 + $0x3d4] ss:$8 sps:$4 sm:$0xff]  }
  0xe9   : > { %1727 = vmatpush1.bf16.msra.mxu0 %v2790_v39  ;;  %1646 = vmatprep.subr.bf16.mxu1 %v2795_v40  ;;  %v1788_v39 = vld [vmem:[%s3950_s1 + $0xc8] sm:$0xff]  ;;  %v1787_v40 = vld [vmem:[%s3950_s1 + $0xc0] sm:$0xff] }
  0xea   : > { %1728 = vmatprep.subr.bf16.mxu0 %v2798_v41  ;;  %v2853_v41 = vld [vmem:[%s3427_s27 + $0x1d0] ss:$8 sps:$4 sm:$0xff]   ;;  %1947 = vperm.xlu1 %2677, %v1788_v39  }
  0xeb   : > { %1942 = vperm.xlu0 %2676, %v1787_v40  }
  0xec   : > { %1647 = vmatpush1.bf16.msra.mxu1 %v2793_v42  ;;  %v2856_v42 = vld [vmem:[%s3427_s27 + $0x3d0] ss:$8 sps:$4 sm:$0xff]  }
  0xed   : > { %1729 = vmatpush1.bf16.msra.mxu0 %v2796_v43  ;;  %1648 = vmatprep.subr.bf16.mxu1 %v2801_v44  ;;  %v2861_v43 = vld [vmem:[%s3427_s27 + $0x1e4] ss:$8 sps:$4 sm:$0xff]  }
  0xee   : > { %1730 = vmatprep.subr.bf16.mxu0 %v2804_v45  ;;  %v2864_v44 = vld [vmem:[%s3427_s27 + $0x3e4] ss:$8 sps:$4 sm:$0xff]   ;;  %v1790_v45 = vld [vmem:[%s3950_s1 + $0xd8] sm:$0xff] }
  0xef   : > { %1957 = vperm.xlu1 %2677, %v1790_v45  }
  0xf0   : > { %1649 = vmatpush1.bf16.msra.mxu1 %v2799_v46  ;;  %v1789_v46 = vld [vmem:[%s3950_s1 + $0xd0] sm:$0xff] }
  0xf1   : > { %1731 = vmatpush1.bf16.msra.mxu0 %v2802_v47  ;;  %1650 = vmatprep.subr.bf16.mxu1 %v2807_v49  ;;  %v2859_v47 = vld [vmem:[%s3427_s27 + $0x1e0] ss:$8 sps:$4 sm:$0xff]   ;;  %v2867_v49 = vld [vmem:[%s3427_s27 + $0x1f4] ss:$8 sps:$4 sm:$0xff]  }
  0xf2   : > { %1732 = vmatprep.subr.bf16.mxu0 %v2810_v50  ;;  %v2870_v50 = vld [vmem:[%s3427_s27 + $0x3f4] ss:$8 sps:$4 sm:$0xff]   ;;  %1952 = vperm.xlu0 %2676, %v1789_v46  }
  0xf4   : > { %1651 = vmatpush1.bf16.msra.mxu1 %v2805_v51  ;;  %v1792_v51 = vld [vmem:[%s3950_s1 + $0xe8] sm:$0xff] }
  0xf5   : > { %1733 = vmatpush1.bf16.msra.mxu0 %v2808_v54  ;;  %1652 = vmatprep.subr.bf16.mxu1 %v2813_v55  ;;  %v2868_v54 = vld [vmem:[%s3427_s27 + $0x3f0] ss:$8 sps:$4 sm:$0xff]   ;;  %v947_v55 = vcombine.high %v3532_v30, %v3532_v30  ;;  %s2420_s27 = sshll.u32 %s3115_s19, 1  ;;  %s3900_s19 = scalar_lea.hbm %s3953_s4, %s2619_s5 }
  0xf6   : > { %1734 = vmatprep.subr.bf16.mxu0 %v2816_v56  ;;  %1967 = vperm.xlu1 %2677, %v1792_v51   ;;  %v948_v56 = vcombine.high %v3536_v31, %v3536_v31  ;;  %p755_p13 = scmp.lt.s32.totalorder %s2420_s27, 7 }
  0xf7   : > { %1962 = vperm.xlu0 %2676, %v1791_v52  }
  0xf8   : > { %1653 = vmatpush1.bf16.msra.mxu1 %v2811_v59  ;;  %s3961_s27 = smov (!%p755_p13, %s2420_s27), 7  ;;  %v3688_v59 = vsub.s32 0, %v3422_v7 }
  0xf9   : > { %1735 = vmatpush1.bf16.msra.mxu0 %v2814_v60  ;;  %1654 = vmatprep.subr.bf16.mxu1 %v2819_v61  ;;  %s757_s28 = scalar_lea.vmem %s3952_s3, %s3961_s27  ;;  %v3691_v61 = vsub.s32 1, %v3422_v7 }
  0xfa   : > { %1736 = vmatprep.subr.bf16.mxu0 %v2822_v62  ;;  %1977 = vperm.xlu1 %2677, %v1794_v57   ;;  %v889_v60 = vld [vmem:[%s757_s28] sm:$0x3] }
  0xfb   : > { %1972 = vperm.xlu0 %2676, %v1793_v58   ;;  %v894_v62 = vrot.slane %v889_v60, %v3688_v59  ;;  %v898_v63 = vrot.slane %v889_v60, %v3691_v61 }
  0xfc   : > { %1655 = vmatpush1.bf16.msra.mxu1 %v2817_v1 }
  0xfd   : > { %1737 = vmatpush1.bf16.msra.mxu0 %v2820_v2  ;;  %1656 = vmatprep.subr.bf16.mxu1 %v2825_v3 }
  0xfe   : > { %1738 = vmatprep.subr.bf16.mxu0 %v2828_v4 }
 0x100   : > { %1657 = vmatpush1.bf16.msra.mxu1 %v2823_v8 }
 0x101   : > { %1739 = vmatpush1.bf16.msra.mxu0 %v2826_v9  ;;  %1658 = vmatprep.subr.bf16.mxu1 %v2831_v10 }
 0x102   : > { %1740 = vmatprep.subr.bf16.mxu0 %v2834_v11 }
 0x104   : > { %1659 = vmatpush1.bf16.msra.mxu1 %v2829_v14 }
 0x105   : > { %1741 = vmatpush1.bf16.msra.mxu0 %v2832_v15  ;;  %1660 = vmatprep.subr.bf16.mxu1 %v2837_v17 }
 0x106   : > { %1742 = vmatprep.subr.bf16.mxu0 %v2840_v18 }
 0x108   : > { %1661 = vmatpush1.bf16.msra.mxu1 %v2835_v23 }
 0x109   : > { %1743 = vmatpush1.bf16.msra.mxu0 %v2838_v24  ;;  %1662 = vmatprep.subr.bf16.mxu1 %v2843_v25 }
 0x10a   : > { %1744 = vmatprep.subr.bf16.mxu0 %v2846_v26 }
 0x10c   : > { %1663 = vmatpush1.bf16.msra.mxu1 %v2841_v29 }
 0x10d   : > { %1745 = vmatpush1.bf16.msra.mxu0 %v2844_v32  ;;  %1664 = vmatprep.subr.bf16.mxu1 %v2849_v35 }
 0x10e   : > { %1746 = vmatprep.subr.bf16.mxu0 %v2852_v36 }
 0x110   : > { %1665 = vmatpush1.bf16.msra.mxu1 %v2847_v37 }
 0x111   : > { %1747 = vmatpush1.bf16.msra.mxu0 %v2850_v38  ;;  %1666 = vmatprep.subr.bf16.mxu1 %v2855_v33 }
 0x112   : > { %1748 = vmatprep.subr.bf16.mxu0 %v2858_v34 }
 0x114   : > { %1667 = vmatpush1.bf16.msra.mxu1 %v2853_v41 }
 0x115   : > { %1749 = vmatpush1.bf16.msra.mxu0 %v2856_v42  ;;  %1668 = vmatprep.subr.bf16.mxu1 %v2861_v43 }
 0x116   : > { %1750 = vmatprep.subr.bf16.mxu0 %v2864_v44 }
 0x118   : > { %1669 = vmatpush1.bf16.msra.mxu1 %v2859_v47 }
 0x119   : > { %1751 = vmatpush1.bf16.msra.mxu0 %v2862_v48  ;;  %1670 = vmatprep.subr.bf16.mxu1 %v2867_v49 }
 0x11a   : > { %1752 = vmatprep.subr.bf16.mxu0 %v2870_v50 }
 0x11b   : > { %v1833_v30 = vpop.permute.xlu1 %1832  ;;  %v1823_v31 = vpop.permute.xlu0 %1822 }
 0x11c   : > { %1671 = vmatpush1.bf16.msra.mxu1 %v2865_v53 }
 0x11d   : > { %1753 = vmatpush1.bf16.msra.mxu0 %v2868_v54 }
 0x11f   : > { %1673 = vmatmul.mubr.bf16.vlgmr.msra.gmra.mrb[0].mxu1 %v947_v55  ;;  %v1838_v0 = vpop.permute.xlu1 %1837 }
 0x120   : > { %1755 = vmatmul.mubr.bf16.vlgmr.msra.gmra.mrb[0].mxu0 %v948_v56  ;;  %v1828_v1 = vpop.permute.xlu0 %1827 }
 0x123   : > { %v1848_v17 = vpop.permute.xlu1 %1847 }
 0x125   : > { %v1843_v15 = vpop.permute.xlu0 %1842 }
 0x127   : > { %v1858_v20 = vpop.permute.xlu1 %1857 }
 0x139   : > { %v1853_v18 = vpop.permute.xlu0 %1852 }
 0x13d   : > { %v1868_v25 = vpop.permute.xlu1 %1867 }
 0x13e   : > { %v1863_v24 = vpop.permute.xlu0 %1862 }
 0x141   : > { %v3706_v32 = vpop.permute.xlu1 %1877 }
 0x142   : > { %v3703_v28 = vpop.permute.xlu0 %1872 }
 0x146   : > { %v3716_v34 = vpop.permute.xlu1 %1887 }
 0x149   : > { %v3712_v37 = vpop.permute.xlu0 %1882 }
 0x14d   : > { %v3727_v48 = vpop.permute.xlu1 %1897 }
 0x14e   : > { %v3722_v44 = vpop.permute.xlu0 %1892 }
 0x1f2   : > { %v1674_v2 = vpop.f32.mrb[0].mxu1 }
 0x1f3   : > { %v1756_v3 = vpop.f32.mrb[0].mxu0  ;;  %v2620_v4 = vadd.f32 %v1674_v2, %v894_v62  ;;  %v1676_v5 = vpop.f32.mrb[1].mxu1 }
 0x1f4   : > { %v1758_v6 = vpop.f32.mrb[1].mxu0  ;;  %v2622_v8 = vadd.f32 %v1676_v5, %v898_v63  ;;  %v1678_v9 = vpop.f32.mrb[2].mxu1 }
 0x1f5   : > { %v1760_v10 = vpop.f32.mrb[2].mxu0  ;;  %v2621_v11 = vadd.f32 %v2620_v4, %v1756_v3  ;;  %v1679_v12 = vpop.f32.mrb[3].mxu1 }
 0x1f6   : > { %v1761_v13 = vpop.f32.mrb[3].mxu0  ;;  %v2623_v14 = vadd.f32 %v2622_v8, %v1758_v6  ;;  %v3744_v3 = vpop.permute.xlu1 %1907 }
 0x1f8   : > { %v1797_v7 = vcombine.low %v2621_v11, %v2623_v14 }
 0x1fa   : > { %v1804_v19 = vrot.slane %v1797_v7, %v3437_v16 }
 0x1fc   : > { %v1812_v23 = vrot.slane %v1804_v19, %v3437_v16  ;;  %v1805_v39 = vcombine.high %v1804_v19, %v1804_v19 }
 0x1fe   : > { %v3698_v26 = vrot.slane %v1812_v23, %v3688_v59  ;;  %v3701_v27 = vrot.slane %v1812_v23, %v3691_v61  ;;  %v1819_v45 = vrot.slane %v1805_v39, %v3437_v16 }
 0x200   : > { %v2000_v29 = vadd.f32 %v3698_v26, %v1823_v31  ;;  %v2001_v35 = vadd.f32 %v3701_v27, %v1823_v31  ;;  %v2002_v36 = vadd.f32 %v3698_v26, %v1828_v1  ;;  %v2003_v21 = vadd.f32 %v3701_v27, %v1828_v1  ;;  %v3740_v31 = vpop.permute.xlu0 %1902 }
 0x201   : > { %v2004_v22 = vadd.f32 %v3698_v26, %v1833_v30  ;;  %v2005_v38 = vadd.f32 %v3701_v27, %v1833_v30  ;;  %v2006_v33 = vadd.f32 %v3698_v26, %v1838_v0  ;;  %v2007_v40 = vadd.f32 %v3701_v27, %v1838_v0 }
 0x202   : > { %2871 = vtanh.f32 %v2000_v29  ;;  %v2008_v41 = vadd.f32 %v3698_v26, %v1843_v15  ;;  %v2009_v42 = vadd.f32 %v3701_v27, %v1843_v15  ;;  %v2010_v43 = vadd.f32 %v3698_v26, %v1848_v17 }
 0x203   : > { %2873 = vtanh.f32 %v2001_v35  ;;  %v2011_v46 = vadd.f32 %v3701_v27, %v1848_v17  ;;  %v2012_v47 = vadd.f32 %v3698_v26, %v1853_v18  ;;  %v2013_v49 = vadd.f32 %v3701_v27, %v1853_v18 }
 0x204   : > { %2875 = vtanh.f32 %v2002_v36  ;;  %v2014_v51 = vadd.f32 %v3698_v26, %v1858_v20  ;;  %v3733_v53 = vrot.slane %v1819_v45, %v3688_v59  ;;  %v2015_v16 = vadd.f32 %v3701_v27, %v1858_v20  ;;  %v3761_v23 = vpop.permute.xlu0 %1912 }
 0x205   : > { %2877 = vtanh.f32 %v2003_v21  ;;  %v3737_v56 = vrot.slane %v1819_v45, %v3691_v61  ;;  %v2016_v57 = vadd.f32 %v3698_v26, %v1863_v24  ;;  %v2017_v60 = vadd.f32 %v3701_v27, %v1863_v24 }
 0x206   : > { %2879 = vtanh.f32 %v2004_v22  ;;  %v2018_v0 = vadd.f32 %v3698_v26, %v1868_v25  ;;  %v2019_v4 = vadd.f32 %v3701_v27, %v1868_v25  ;;  %v2020_v9 = vadd.f32 %v3698_v26, %v3703_v28 }
 0x207   : > { %2881 = vtanh.f32 %v2005_v38  ;;  %v2021_v13 = vadd.f32 %v3701_v27, %v3703_v28  ;;  %v2022_v17 = vadd.f32 %v3698_v26, %v3706_v32  ;;  %v2023_v24 = vadd.f32 %v3701_v27, %v3706_v32  ;;  %v3769_v38 = vpop.permute.xlu1 %1917 }
 0x208   : > { %2883 = vtanh.f32 %v2006_v33  ;;  %v2024_v35 = vadd.f32 %v3698_v26, %v3712_v37  ;;  %v2025_v32 = vadd.f32 %v3701_v27, %v3712_v37 }
 0x209   : > { %2885 = vtanh.f32 %v2007_v40 }
 0x20a   : > { %2887 = vtanh.f32 %v2008_v41  ;;  %v2026_v41 = vadd.f32 %v3698_v26, %v3716_v34 }
 0x20b   : > { %2889 = vtanh.f32 %v2009_v42 }
 0x20c   : > { %v2872_v50 = vpop.eup %2871  ;;  %2891 = vtanh.f32 %v2010_v43 }
 0x20d   : > { %v2874_v52 = vpop.eup %2873  ;;  %2893 = vtanh.f32 %v2011_v46  ;;  %v2128_v54 = vmul.f32 2.0, %v2872_v50  ;;  %v2027_v46 = vadd.f32 %v3701_v27, %v3716_v34  ;;  %v2028_v50 = vadd.f32 %v3698_v26, %v3722_v44 }
 0x20e   : > { %v2876_v55 = vpop.eup %2875  ;;  %2895 = vtanh.f32 %v2012_v47  ;;  %v2129_v58 = vmul.f32 2.0, %v2874_v52  ;;  %v2029_v34 = vadd.f32 %v3701_v27, %v3722_v44  ;;  %v2031_v44 = vadd.f32 %v3701_v27, %v3727_v48 }
 0x20f   : > { %v2878_v30 = vpop.eup %2877  ;;  %2897 = vtanh.f32 %v2013_v49  ;;  %v2130_v59 = vmul.f32 2.0, %v2876_v55  ;;  %v2549_v62 = vadd.f32 -1.0, %v2128_v54  ;;  %v3783_v54 = vpop.permute.xlu0 %1922 }
 0x210   : > { %v2880_v63 = vpop.eup %2879  ;;  %2899 = vtanh.f32 %v2014_v51  ;;  %v2131_v1 = vmul.f32 2.0, %v2878_v30  ;;  %v2550_v61 = vadd.f32 -1.0, %v2129_v58  ;;  %v2030_v30 = vadd.f32 %v3698_v26, %v3727_v48 }
 0x211   : > { %v2882_v2 = vpop.eup %2881  ;;  %2901 = vtanh.f32 %v2015_v16  ;;  %v2132_v5 = vmul.f32 2.0, %v2880_v63  ;;  %v2551_v6 = vadd.f32 -1.0, %v2130_v59  ;;  %2256 = vst [vmem:[%s3749_s30] sm:$0xff] %v2549_v62  ;;  %v3791_v63 = vpop.permute.xlu1 %1927  ;;  %v2032_v26 = vadd.f32 %v3733_v53, %v3740_v31 }
 0x212   : > { %v2884_v8 = vpop.eup %2883  ;;  %2903 = vtanh.f32 %v2016_v57  ;;  %v2133_v10 = vmul.f32 2.0, %v2882_v2  ;;  %v2552_v11 = vadd.f32 -1.0, %v2131_v1  ;;  %2257 = vst [vmem:[%s3749_s30 + $0x8] sm:$0xff] %v2550_v61 }
 0x213   : > { %v2886_v12 = vpop.eup %2885  ;;  %2905 = vtanh.f32 %v2017_v60  ;;  %v2134_v14 = vmul.f32 2.0, %v2884_v8  ;;  %v2553_v7 = vadd.f32 -1.0, %v2132_v5  ;;  %2258 = vst [vmem:[%s3749_s30 + $0x10] sm:$0xff] %v2551_v6  ;;  %v2033_v6 = vadd.f32 %v3737_v56, %v3740_v31 }
 0x214   : > { %v2888_v15 = vpop.eup %2887  ;;  %2907 = vtanh.f32 %v2018_v0  ;;  %v2135_v18 = vmul.f32 2.0, %v2886_v12  ;;  %v2554_v19 = vadd.f32 -1.0, %v2133_v10  ;;  %2259 = vst [vmem:[%s3749_s30 + $0x18] sm:$0xff] %v2552_v11  ;;  %v2035_v31 = vadd.f32 %v3737_v56, %v3744_v3 }
 0x215   : > { %v2890_v20 = vpop.eup %2889  ;;  %2909 = vtanh.f32 %v2019_v4  ;;  %v2136_v25 = vmul.f32 2.0, %v2888_v15  ;;  %v2555_v28 = vadd.f32 -1.0, %v2134_v14  ;;  %2260 = vst [vmem:[%s3749_s30 + $0x20] sm:$0xff] %v2553_v7 }
 0x216   : > { %v2892_v29 = vpop.eup %2891  ;;  %2911 = vtanh.f32 %v2020_v9  ;;  %v2137_v36 = vmul.f32 2.0, %v2890_v20  ;;  %v2556_v21 = vadd.f32 -1.0, %v2135_v18  ;;  %2261 = vst [vmem:[%s3749_s30 + $0x28] sm:$0xff] %v2554_v19  ;;  %v2034_v9 = vadd.f32 %v3733_v53, %v3744_v3 }
 0x217   : > { %v2894_v22 = vpop.eup %2893  ;;  %2913 = vtanh.f32 %v2021_v13  ;;  %v2138_v33 = vmul.f32 2.0, %v2892_v29  ;;  %v2557_v39 = vadd.f32 -1.0, %v2136_v25  ;;  %2262 = vst [vmem:[%s3749_s30 + $0x30] sm:$0xff] %v2555_v28  ;;  %v3805_v13 = vpop.permute.xlu0 %1932  ;;  %v2037_v3 = vadd.f32 %v3737_v56, %v3761_v23 }
 0x218   : > { %v2896_v40 = vpop.eup %2895  ;;  %2915 = vtanh.f32 %v2022_v17  ;;  %v2139_v42 = vmul.f32 2.0, %v2894_v22  ;;  %v2558_v43 = vadd.f32 -1.0, %v2137_v36  ;;  %2263 = vst [vmem:[%s3749_s30 + $0x38] sm:$0xff] %v2556_v21  ;;  %v2036_v17 = vadd.f32 %v3733_v53, %v3761_v23 }
 0x219   : > { %v2898_v45 = vpop.eup %2897  ;;  %2917 = vtanh.f32 %v2023_v24  ;;  %v2140_v37 = vmul.f32 2.0, %v2896_v40  ;;  %v2559_v47 = vadd.f32 -1.0, %v2138_v33  ;;  %2264 = vst [vmem:[%s3749_s30 + $0x40] sm:$0xff] %v2557_v39  ;;  %v3813_v24 = vpop.permute.xlu1 %1937  ;;  %v2040_v40 = vadd.f32 %v3733_v53, %v3783_v54 }
 0x21a   : > { %v2900_v49 = vpop.eup %2899  ;;  %2919 = vtanh.f32 %v2024_v35  ;;  %v2141_v51 = vmul.f32 2.0, %v2898_v45  ;;  %v2560_v52 = vadd.f32 -1.0, %v2139_v42  ;;  %2265 = vst [vmem:[%s3749_s30 + $0x48] sm:$0xff] %v2558_v43  ;;  %v2038_v35 = vadd.f32 %v3733_v53, %v3769_v38 }
 0x21b   : > { %v2902_v16 = vpop.eup %2901  ;;  %2921 = vtanh.f32 %v2025_v32  ;;  %v2142_v55 = vmul.f32 2.0, %v2900_v49  ;;  %v2561_v57 = vadd.f32 -1.0, %v2140_v37  ;;  %2266 = vst [vmem:[%s3749_s30 + $0x50] sm:$0xff] %v2559_v47  ;;  %v2039_v32 = vadd.f32 %v3737_v56, %v3769_v38  ;;  %v1943_v45 = vpop.permute.xlu0 %1942 }
 0x21c   : > { %v2904_v58 = vpop.eup %2903  ;;  %2923 = vtanh.f32 %v2026_v41  ;;  %v2143_v60 = vmul.f32 2.0, %v2902_v16  ;;  %v2562_v59 = vadd.f32 -1.0, %v2141_v51  ;;  %2267 = vst [vmem:[%s3749_s30 + $0x58] sm:$0xff] %v2560_v52  ;;  %v2042_v49 = vadd.f32 %v3733_v53, %v3791_v63 }
 0x21d   : > { %v2906_v62 = vpop.eup %2905  ;;  %2925 = vtanh.f32 %v2027_v46  ;;  %v2144_v0 = vmul.f32 2.0, %v2904_v58  ;;  %v2563_v1 = vadd.f32 -1.0, %v2142_v55  ;;  %2268 = vst [vmem:[%s3749_s30 + $0x60] sm:$0xff] %v2561_v57  ;;  %v2041_v46 = vadd.f32 %v3737_v56, %v3783_v54  ;;  %v1948_v16 = vpop.permute.xlu1 %1947 }
 0x21e   : > { %v2908_v61 = vpop.eup %2907  ;;  %2927 = vtanh.f32 %v2028_v50  ;;  %v2145_v2 = vmul.f32 2.0, %v2906_v62  ;;  %v2564_v4 = vadd.f32 -1.0, %v2143_v60  ;;  %2269 = vst [vmem:[%s3749_s30 + $0x68] sm:$0xff] %v2562_v59  ;;  %v2044_v58 = vadd.f32 %v3733_v53, %v3805_v13 }
 0x21f   : > { %v2910_v5 = vpop.eup %2909  ;;  %2929 = vtanh.f32 %v2029_v34  ;;  %v2146_v27 = vmul.f32 2.0, %v2908_v61  ;;  %v2565_v48 = vadd.f32 -1.0, %v2144_v0  ;;  %2270 = vst [vmem:[%s3749_s30 + $0x70] sm:$0xff] %v2563_v1  ;;  %v2043_v34 = vadd.f32 %v3737_v56, %v3791_v63 }
 0x220   : > { %v2912_v8 = vpop.eup %2911  ;;  %2931 = vtanh.f32 %v2030_v30  ;;  %v2147_v10 = vmul.f32 2.0, %v2910_v5  ;;  %v2566_v11 = vadd.f32 -1.0, %v2145_v2  ;;  %2271 = vst [vmem:[%s3749_s30 + $0x78] sm:$0xff] %v2564_v4  ;;  %v2045_v62 = vadd.f32 %v3737_v56, %v3805_v13  ;;  %v1953_v4 = vpop.permute.xlu0 %1952 }
 0x221   : > { %v2914_v12 = vpop.eup %2913  ;;  %2933 = vtanh.f32 %v2031_v44  ;;  %v2148_v14 = vmul.f32 2.0, %v2912_v8  ;;  %v2567_v7 = vadd.f32 -1.0, %v2146_v27  ;;  %2272 = vst [vmem:[%s3749_s30 + $0x80] sm:$0xff] %v2565_v48  ;;  %v2046_v1 = vadd.f32 %v3733_v53, %v3813_v24 }
 0x222   : > { %v2916_v15 = vpop.eup %2915  ;;  %2935 = vtanh.f32 %v2032_v26  ;;  %v2149_v18 = vmul.f32 2.0, %v2914_v12  ;;  %v2568_v19 = vadd.f32 -1.0, %v2147_v10  ;;  %2273 = vst [vmem:[%s3749_s30 + $0x88] sm:$0xff] %v2566_v11  ;;  %v2047_v5 = vadd.f32 %v3737_v56, %v3813_v24  ;;  %v1958_v12 = vpop.permute.xlu1 %1957 }
 0x223   : > { %v2918_v20 = vpop.eup %2917  ;;  %2937 = vtanh.f32 %v2033_v6  ;;  %v2150_v25 = vmul.f32 2.0, %v2916_v15  ;;  %v2569_v28 = vadd.f32 -1.0, %v2148_v14  ;;  %2274 = vst [vmem:[%s3749_s30 + $0x90] sm:$0xff] %v2567_v7  ;;  %v2048_v8 = vadd.f32 %v3733_v53, %v1943_v45 }
 0x224   : > { %v2920_v29 = vpop.eup %2919  ;;  %2939 = vtanh.f32 %v2034_v9  ;;  %v2151_v36 = vmul.f32 2.0, %v2918_v20  ;;  %v2570_v21 = vadd.f32 -1.0, %v2149_v18  ;;  %2275 = vst [vmem:[%s3749_s30 + $0x98] sm:$0xff] %v2568_v19  ;;  %v2049_v13 = vadd.f32 %v3737_v56, %v1943_v45 }
 0x225   : > { %v2922_v22 = vpop.eup %2921  ;;  %2941 = vtanh.f32 %v2035_v31  ;;  %v2152_v23 = vmul.f32 2.0, %v2920_v29  ;;  %v2571_v33 = vadd.f32 -1.0, %v2150_v25  ;;  %2276 = vst [vmem:[%s3749_s30 + $0xa0] sm:$0xff] %v2569_v28  ;;  %v2050_v15 = vadd.f32 %v3733_v53, %v1948_v16 }
 0x226   : > { %v2924_v39 = vpop.eup %2923  ;;  %2943 = vtanh.f32 %v2036_v17  ;;  %v2153_v41 = vmul.f32 2.0, %v2922_v22  ;;  %v2572_v42 = vadd.f32 -1.0, %v2151_v36  ;;  %2277 = vst [vmem:[%s3749_s30 + $0xa8] sm:$0xff] %v2570_v21  ;;  %v2051_v20 = vadd.f32 %v3737_v56, %v1948_v16  ;;  %v1963_v21 = vpop.permute.xlu0 %1962 }
 0x227   : > { %v2926_v43 = vpop.eup %2925  ;;  %2945 = vtanh.f32 %v2037_v3  ;;  %v2154_v38 = vmul.f32 2.0, %v2924_v39  ;;  %v2573_v37 = vadd.f32 -1.0, %v2152_v23  ;;  %2278 = vst [vmem:[%s3749_s30 + $0xb0] sm:$0xff] %v2571_v33  ;;  %v2052_v28 = vadd.f32 %v3733_v53, %v1953_v4 }
 0x228   : > { %v2928_v47 = vpop.eup %2927  ;;  %2947 = vtanh.f32 %v2038_v35  ;;  %v2155_v50 = vmul.f32 2.0, %v2926_v43  ;;  %v2574_v51 = vadd.f32 -1.0, %v2153_v41  ;;  %2279 = vst [vmem:[%s3749_s30 + $0xb8] sm:$0xff] %v2572_v42  ;;  %v2053_v22 = vadd.f32 %v3737_v56, %v1953_v4  ;;  %v1968_v43 = vpop.permute.xlu1 %1967 }
 0x229   : > { %v2930_v52 = vpop.eup %2929  ;;  %2949 = vtanh.f32 %v2039_v32  ;;  %v2156_v54 = vmul.f32 2.0, %v2928_v47  ;;  %v2575_v55 = vadd.f32 -1.0, %v2154_v38  ;;  %2280 = vst [vmem:[%s3749_s30 + $0xc0] sm:$0xff] %v2573_v37  ;;  %v2054_v39 = vadd.f32 %v3733_v53, %v1958_v12 }
 0x22a   : > { %v2932_v57 = vpop.eup %2931  ;;  %2951 = vtanh.f32 %v2040_v40  ;;  %v2157_v30 = vmul.f32 2.0, %v2930_v52  ;;  %v2576_v60 = vadd.f32 -1.0, %v2155_v50  ;;  %2281 = vst [vmem:[%s3749_s30 + $0xc8] sm:$0xff] %v2574_v51  ;;  %v2055_v45 = vadd.f32 %v3737_v56, %v1958_v12 }
 0x22b   : > { %v2934_v59 = vpop.eup %2933  ;;  %2953 = vtanh.f32 %v2041_v46  ;;  %v2158_v63 = vmul.f32 2.0, %v2932_v57  ;;  %v2577_v44 = vadd.f32 -1.0, %v2156_v54  ;;  %2282 = vst [vmem:[%s3749_s30 + $0xd0] sm:$0xff] %v2575_v55  ;;  %v2056_v47 = vadd.f32 %v3733_v53, %v1963_v21 }
 0x22c   : > { %v2936_v0 = vpop.eup %2935  ;;  %2955 = vtanh.f32 %v2042_v49  ;;  %v2159_v61 = vmul.f32 2.0, %v2934_v59  ;;  %v2578_v26 = vadd.f32 -1.0, %v2157_v30  ;;  %2283 = vst [vmem:[%s3749_s30 + $0xd8] sm:$0xff] %v2576_v60  ;;  %v2057_v52 = vadd.f32 %v3737_v56, %v1963_v21  ;;  %v1973_v60 = vpop.permute.xlu0 %1972 }
 0x22d   : > { %v2938_v2 = vpop.eup %2937  ;;  %2957 = vtanh.f32 %v2043_v34  ;;  %v2160_v6 = vmul.f32 2.0, %v2936_v0  ;;  %v2579_v27 = vadd.f32 -1.0, %v2158_v63  ;;  %2284 = vst [vmem:[%s3749_s30 + $0xe0] sm:$0xff] %v2577_v44  ;;  %v2058_v55 = vadd.f32 %v3733_v53, %v1968_v43 }
 0x22e   : > { %v2940_v48 = vpop.eup %2939  ;;  %2959 = vtanh.f32 %v2044_v58  ;;  %v2161_v9 = vmul.f32 2.0, %v2938_v2  ;;  %v2580_v10 = vadd.f32 -1.0, %v2159_v61  ;;  %2285 = vst [vmem:[%s3749_s30 + $0xe8] sm:$0xff] %v2578_v26  ;;  %v2059_v59 = vadd.f32 %v3737_v56, %v1968_v43  ;;  %v1978_v2 = vpop.permute.xlu1 %1977 }
 0x22f   : > { %v2942_v11 = vpop.eup %2941  ;;  %2961 = vtanh.f32 %v2045_v62  ;;  %v2162_v31 = vmul.f32 2.0, %v2940_v48  ;;  %v2581_v14 = vadd.f32 -1.0, %v2160_v6  ;;  %2286 = vst [vmem:[%s3749_s30 + $0xf0] sm:$0xff] %v2579_v27  ;;  %v2060_v0 = vadd.f32 %v3733_v53, %v1973_v60 }
 0x230   : > { %v2944_v7 = vpop.eup %2943  ;;  %2963 = vtanh.f32 %v2046_v1  ;;  %v2163_v17 = vmul.f32 2.0, %v2942_v11  ;;  %v2582_v18 = vadd.f32 -1.0, %v2161_v9  ;;  %2287 = vst [vmem:[%s3749_s30 + $0xf8] sm:$0xff] %v2580_v10  ;;  %v2061_v4 = vadd.f32 %v3737_v56, %v1973_v60 }
 0x231   : > { %v2946_v19 = vpop.eup %2945  ;;  %2965 = vtanh.f32 %v2047_v5  ;;  %v2164_v24 = vmul.f32 2.0, %v2944_v7  ;;  %v2583_v3 = vadd.f32 -1.0, %v2162_v31  ;;  %2288 = vst [vmem:[%s3749_s30 + $0x100] sm:$0xff] %v2581_v14  ;;  %v2062_v48 = vadd.f32 %v3733_v53, %v1978_v2 }
 0x232   : > { %v2948_v25 = vpop.eup %2947  ;;  %2967 = vtanh.f32 %v2048_v8  ;;  %v2165_v29 = vmul.f32 2.0, %v2946_v19  ;;  %v2584_v35 = vadd.f32 -1.0, %v2163_v17  ;;  %2289 = vst [vmem:[%s3749_s30 + $0x108] sm:$0xff] %v2582_v18  ;;  %v2063_v11 = vadd.f32 %v3737_v56, %v1978_v2 }
 0x233   : > { %v2950_v36 = vpop.eup %2949  ;;  %2969 = vtanh.f32 %v2049_v13  ;;  %v2166_v32 = vmul.f32 2.0, %v2948_v25  ;;  %v2585_v23 = vadd.f32 -1.0, %v2164_v24  ;;  %2290 = vst [vmem:[%s3749_s30 + $0x110] sm:$0xff] %v2583_v3 }
 0x234   : > { %v2952_v33 = vpop.eup %2951  ;;  %2971 = vtanh.f32 %v2050_v15  ;;  %v2167_v40 = vmul.f32 2.0, %v2950_v36  ;;  %v2586_v41 = vadd.f32 -1.0, %v2165_v29  ;;  %2291 = vst [vmem:[%s3749_s30 + $0x118] sm:$0xff] %v2584_v35 }
 0x235   : > { %v2954_v42 = vpop.eup %2953  ;;  %2973 = vtanh.f32 %v2051_v20  ;;  %v2168_v46 = vmul.f32 2.0, %v2952_v33  ;;  %v2587_v38 = vadd.f32 -1.0, %v2166_v32  ;;  %2292 = vst [vmem:[%s3749_s30 + $0x120] sm:$0xff] %v2585_v23 }
 0x236   : > { %v2956_v37 = vpop.eup %2955  ;;  %2975 = vtanh.f32 %v2052_v28  ;;  %v2169_v49 = vmul.f32 2.0, %v2954_v42  ;;  %v2588_v50 = vadd.f32 -1.0, %v2167_v40  ;;  %2293 = vst [vmem:[%s3749_s30 + $0x128] sm:$0xff] %v2586_v41 }
 0x237   : > { %v2958_v51 = vpop.eup %2957  ;;  %2977 = vtanh.f32 %v2053_v22  ;;  %v2170_v16 = vmul.f32 2.0, %v2956_v37  ;;  %v2589_v34 = vadd.f32 -1.0, %v2168_v46  ;;  %2294 = vst [vmem:[%s3749_s30 + $0x130] sm:$0xff] %v2587_v38 }
 0x238   : > { %v2960_v54 = vpop.eup %2959  ;;  %2979 = vtanh.f32 %v2054_v39  ;;  %v2171_v57 = vmul.f32 2.0, %v2958_v51  ;;  %v2590_v58 = vadd.f32 -1.0, %v2169_v49  ;;  %2295 = vst [vmem:[%s3749_s30 + $0x138] sm:$0xff] %v2588_v50 }
 0x239   : > { %v2962_v30 = vpop.eup %2961  ;;  %2981 = vtanh.f32 %v2055_v45  ;;  %v2172_v62 = vmul.f32 2.0, %v2960_v54  ;;  %v2591_v63 = vadd.f32 -1.0, %v2170_v16  ;;  %2296 = vst [vmem:[%s3749_s30 + $0x140] sm:$0xff] %v2589_v34 }
 0x23a   : > { %v2964_v44 = vpop.eup %2963  ;;  %2983 = vtanh.f32 %v2056_v47  ;;  %v2173_v1 = vmul.f32 2.0, %v2962_v30  ;;  %v2592_v61 = vadd.f32 -1.0, %v2171_v57  ;;  %2297 = vst [vmem:[%s3749_s30 + $0x148] sm:$0xff] %v2590_v58 }
 0x23b   : > { %v2966_v26 = vpop.eup %2965  ;;  %2985 = vtanh.f32 %v2057_v52  ;;  %v2174_v5 = vmul.f32 2.0, %v2964_v44  ;;  %v2593_v6 = vadd.f32 -1.0, %v2172_v62  ;;  %2298 = vst [vmem:[%s3749_s30 + $0x150] sm:$0xff] %v2591_v63 }
 0x23c   : > { %v2968_v27 = vpop.eup %2967  ;;  %2987 = vtanh.f32 %v2058_v55  ;;  %v2175_v8 = vmul.f32 2.0, %v2966_v26  ;;  %v2594_v9 = vadd.f32 -1.0, %v2173_v1  ;;  %2299 = vst [vmem:[%s3749_s30 + $0x158] sm:$0xff] %v2592_v61 }
 0x23d   : > { %v2970_v10 = vpop.eup %2969  ;;  %2989 = vtanh.f32 %v2059_v59  ;;  %v2176_v12 = vmul.f32 2.0, %v2968_v27  ;;  %v2595_v13 = vadd.f32 -1.0, %v2174_v5  ;;  %2300 = vst [vmem:[%s3749_s30 + $0x160] sm:$0xff] %v2593_v6 }
 0x23e   : > { %v2972_v31 = vpop.eup %2971  ;;  %2991 = vtanh.f32 %v2060_v0  ;;  %v2177_v14 = vmul.f32 2.0, %v2970_v10  ;;  %v2596_v7 = vadd.f32 -1.0, %v2175_v8  ;;  %2301 = vst [vmem:[%s3749_s30 + $0x168] sm:$0xff] %v2594_v9 }
 0x23f   : > { %v2974_v53 = vpop.eup %2973  ;;  %2993 = vtanh.f32 %v2061_v4  ;;  %v2178_v15 = vmul.f32 2.0, %v2972_v31  ;;  %v2597_v17 = vadd.f32 -1.0, %v2176_v12  ;;  %2302 = vst [vmem:[%s3749_s30 + $0x170] sm:$0xff] %v2595_v13 }
 0x240   : > { %v2976_v18 = vpop.eup %2975  ;;  %2995 = vtanh.f32 %v2062_v48  ;;  %v2179_v56 = vmul.f32 2.0, %v2974_v53  ;;  %v2598_v19 = vadd.f32 -1.0, %v2177_v14  ;;  %2303 = vst [vmem:[%s3749_s30 + $0x178] sm:$0xff] %v2596_v7 }
 0x241   : > { %v2978_v20 = vpop.eup %2977  ;;  %2997 = vtanh.f32 %v2063_v11  ;;  %v2180_v24 = vmul.f32 2.0, %v2976_v18  ;;  %v2599_v3 = vadd.f32 -1.0, %v2178_v15  ;;  %2304 = vst [vmem:[%s3749_s30 + $0x180] sm:$0xff] %v2597_v17 }
 0x242   : > { %v2980_v25 = vpop.eup %2979  ;;  %v2181_v28 = vmul.f32 2.0, %v2978_v20  ;;  %v2600_v29 = vadd.f32 -1.0, %v2179_v56  ;;  %2305 = vst [vmem:[%s3749_s30 + $0x188] sm:$0xff] %v2598_v19 }
 0x243   : > { %v2982_v35 = vpop.eup %2981  ;;  %v2182_v36 = vmul.f32 2.0, %v2980_v25  ;;  %v2601_v21 = vadd.f32 -1.0, %v2180_v24  ;;  %2306 = vst [vmem:[%s3749_s30 + $0x190] sm:$0xff] %v2599_v3 }
 0x244   : > { %v2984_v22 = vpop.eup %2983  ;;  %v2183_v32 = vmul.f32 2.0, %v2982_v35  ;;  %v2602_v23 = vadd.f32 -1.0, %v2181_v28  ;;  %2307 = vst [vmem:[%s3749_s30 + $0x198] sm:$0xff] %v2600_v29 }
 0x245   : > { %v2986_v33 = vpop.eup %2985  ;;  %v2184_v39 = vmul.f32 2.0, %v2984_v22  ;;  %v2603_v40 = vadd.f32 -1.0, %v2182_v36  ;;  %2308 = vst [vmem:[%s3749_s30 + $0x1a0] sm:$0xff] %v2601_v21 }
 0x246   : > { %v2988_v41 = vpop.eup %2987  ;;  %v2185_v42 = vmul.f32 2.0, %v2986_v33  ;;  %v2604_v43 = vadd.f32 -1.0, %v2183_v32  ;;  %2309 = vst [vmem:[%s3749_s30 + $0x1a8] sm:$0xff] %v2602_v23 }
 0x247   : > { %v2990_v45 = vpop.eup %2989  ;;  %v2186_v46 = vmul.f32 2.0, %v2988_v41  ;;  %v2605_v38 = vadd.f32 -1.0, %v2184_v39  ;;  %2310 = vst [vmem:[%s3749_s30 + $0x1b0] sm:$0xff] %v2603_v40 }
 0x248   : > { %v2992_v37 = vpop.eup %2991  ;;  %v2187_v47 = vmul.f32 2.0, %v2990_v45  ;;  %v2606_v49 = vadd.f32 -1.0, %v2185_v42  ;;  %2311 = vst [vmem:[%s3749_s30 + $0x1b8] sm:$0xff] %v2604_v43 }
 0x249   : > { %v2994_v50 = vpop.eup %2993  ;;  %v2188_v51 = vmul.f32 2.0, %v2992_v37  ;;  %v2607_v52 = vadd.f32 -1.0, %v2186_v46  ;;  %2312 = vst [vmem:[%s3749_s30 + $0x1c0] sm:$0xff] %v2605_v38 }
 0x24a   : > { %v2996_v16 = vpop.eup %2995  ;;  %v2189_v34 = vmul.f32 2.0, %v2994_v50  ;;  %v2608_v54 = vadd.f32 -1.0, %v2187_v47  ;;  %2313 = vst [vmem:[%s3749_s30 + $0x1c8] sm:$0xff] %v2606_v49 }
 0x24b   : > { %v2998_v55 = vpop.eup %2997  ;;  %v2190_v57 = vmul.f32 2.0, %v2996_v16  ;;  %v2609_v58 = vadd.f32 -1.0, %v2188_v51  ;;  %2314 = vst [vmem:[%s3749_s30 + $0x1d0] sm:$0xff] %v2607_v52 }
 0x24c   : > { %v2191_v30 = vmul.f32 2.0, %v2998_v55  ;;  %v2610_v60 = vadd.f32 -1.0, %v2189_v34  ;;  %2315 = vst [vmem:[%s3749_s30 + $0x1d8] sm:$0xff] %v2608_v54 }
 0x24d   : > { %v2611_v59 = vadd.f32 -1.0, %v2190_v57  ;;  %2316 = vst [vmem:[%s3749_s30 + $0x1e0] sm:$0xff] %v2609_v58 }
 0x24e   : > { %v2612_v62 = vadd.f32 -1.0, %v2191_v30  ;;  %2317 = vst [vmem:[%s3749_s30 + $0x1e8] sm:$0xff] %v2610_v60 }
 0x24f   : > { %2318 = vst [vmem:[%s3749_s30 + $0x1f0] sm:$0xff] %v2611_v59 }
 0x250   : > { %2319 = vst [vmem:[%s3749_s30 + $0x1f8] sm:$0xff] %v2612_v62 }
 0x251   : > { %3012 = shalt.err (!%p3009_p7)
}
 0x252   : > { %s3013_s20 = scalar_lea.hbm %s3900_s19, 8192  ;;  %s3017_s23 = scalar_lea.hbm %s3953_s4, 32768 }
 0x253   : > { %p3014_p9 = scmp.ne.s32.totalorder %s3900_s19, %s3013_s20  ;;  %p3018_p12 = scmp.lt.u32.totalorder %s3900_s19, %s3953_s4 }
 0x254   : > { %p3019_p13 = scmp.lt.u32.totalorder %s3017_s23, %s3013_s20  ;;  %p3021_p1 = scmp.lt.u32.totalorder %s3013_s20, %s3900_s19 }
 0x255   : > { %p3015_p10 = pnand %p3014_p9, %p3133_p6 }
 0x256   : > { %p3020_p0 = por %p3019_p13, %p3018_p12 }
 0x257   : > { %p3016_p11 = pneg %p3015_p10 }
 0x258   : > { %p3022_p2 = por %p3021_p1, %p3020_p0 }
 0x25a   : > { %p3023_p3 = pnand %p3022_p2, %p3016_p11 }
 0x25c   : > { %3026 = shalt.err (!%p3023_p3)
}
 0x25d   : > { %s3066_s30 = smov 256   ;;  %s3067_s5 = smov 1024  }
 0x25e   : > { %s3068_s7 = smov 16  }
 0x25f   : > { %2632 = dma.vmem_to_hbm [thread:$0]  (%p3133_p6), %s3903_s6, 8192, %s3900_s19, %s2321_s10, %s3066_s30, %s3067_s5, %s3068_s7  }
 0x260 PF: > { %p2638_p4 = scmp.ge.s32.totalorder %s3061_s18, 2  ;;  %s2349_s9 = sand.u32 1, %s3049_s15  }
 0x261   : > { %s2350_s11 = scalar_lea.sflag [#allocation4], %s2349_s9 }
 0x262   : > { %p2635_p5 = pnand %p2638_p4, %p3137_p8 }
 0x264   : > { %3044 = dma.done.wait (!%p2635_p5), %s2350_s11, 8192  }
 0x265   : > { %3046 = vsyncadd (!%p2635_p5), %s2350_s11, 4294959104  ;;  %p14_p7 = scmp.ge.s32.totalorder %s3119_s21, 6   ;;  %s3956_s15 = smov %s3053_s16 }
 0x266   : > { %s3957_s16 = smov %s3057_s17  ;;  %s3958_s17 = smov %s3131_s24 }
 0x267   : > { %s3959_s18 = smov %s3119_s21  ;;  %16 = sbr.rel (!%p14_p7) target bundleno = 3 (0x3), region = 117 }
 0x26e   :  { %2355 = vsyncpa [#allocation4], 1 }
 0x26f   :  { %2357 = vsyncpa [#allocation4 + $0x1], 1 }

</bundles_post_ra>
